<compile_context>
chip_gen: v5e
topology: v5e:2x2
jax: 0.10.0
libtpu: 0.0.40
codegen_flags: <defaults>
</compile_context>

<pallas_src>
import functools

import jax
import jax.numpy as jnp
from jax.experimental import pallas as pl
from jax.experimental.pallas import tpu as pltpu


def _legacy_stem_kernel(x_ee_ref, x_eo_ref, x_oe_ref, x_oo_ref,
                        w_ref, b_ref, o_ref, *, ksize):
    """Fused 3x3 conv + 2x2/2 max-pool + bias + ReLU for one output strip.

    x_??_ref: (Ho+1, Wo+1, Cin) bf16 parity planes of the padded NHWC image for
              the current batch element; plane [pr][pc][i, j, :] == x_pad[2i+pr, 2j+pc, :].
    w_ref:    (KH*KW, Cin, CP) bf16 conv weights, Cout zero-padded to CP.
    b_ref:    (1, CP) f32 bias (padded).
    o_ref:    (SH, Wo, CP) bf16 pooled output strip.
    """
    sh, wo, cp = o_ref.shape
    cin = w_ref.shape[1]
    planes = (x_ee_ref, x_eo_ref, x_oe_ref, x_oo_ref)     # index: pr * 2 + pc

    # First pooled row of this strip.
    h0 = pl.multiple_of(pl.program_id(1) * sh, sh)

    pooled = None                                          # (sh*wo, cp) f32
    for dh in range(2):                                    # pool phase (rows)
        for dw in range(2):                                # pool phase (cols)
            acc = None                                     # conv of this phase
            for kh in range(ksize):
                for kw in range(ksize):
                    pr, oi = (dh + kh) & 1, (dh + kh) >> 1
                    pc, oj = (dw + kw) & 1, (dw + kw) >> 1
                    tap = planes[pr * 2 + pc][pl.ds(h0 + oi, sh),
                                              pl.ds(oj, wo), :]
                    d = jnp.dot(tap.reshape(sh * wo, cin),
                                w_ref[kh * ksize + kw],
                                preferred_element_type=jnp.float32)
                    acc = d if acc is None else acc + d
            pooled = acc if pooled is None else jnp.maximum(pooled, acc)

    # Bias + ReLU once, after the pool max (exact: per-channel constant bias,
    # monotone ReLU).  All f32; cast to bf16 only at the lane-dense store.
    out = jnp.maximum(pooled + b_ref[...], 0.0)
    o_ref[...] = out.reshape(sh, wo, cp).astype(o_ref.dtype)


def legacy_model_forward(x_nchw, w_hwio, bias, *, strip_rows=None):
    """Equivalent of LegacyModel(model).forward(x) for the stand-in stem."""
    B, Cin, H, W = x_nchw.shape
    KH, KW, _, Cout = w_hwio.shape
    assert KH == 3 and KW == 3, "stand-in stem uses a 3x3 SAME conv"
    assert H % 2 == 0 and W % 2 == 0, "2x2/2 max-pool assumes even H, W"
    Ho, Wo = H // 2, W // 2
    CP = ((Cout + 127) // 128) * 128             # lane-dense channel padding

    if strip_rows is None:
        # Largest divisor of Ho keeping the f32 phase accumulator <= ~512 KiB.
        strip_rows = Ho
        while strip_rows > 1 and strip_rows * Wo * CP * 4 > 512 * 1024:
            strip_rows -= 1
        while Ho % strip_rows:
            strip_rows -= 1
    assert Ho % strip_rows == 0
    SH = strip_rows

    # NCHW -> NHWC, bf16 for the MXU, SAME (pad=1) padding.
    x = jnp.transpose(x_nchw, (0, 2, 3, 1)).astype(jnp.bfloat16)
    xp = jnp.pad(x, ((0, 0), (1, 1), (1, 1), (0, 0)))
    # Even/odd row/col parity planes (1x the activation bytes; replaces the
    # previous 9x im2col materialization).  Plane [pr][pc][b, i, j, :] ==
    # x_pad[b, 2i+pr, 2j+pc, :], shape (B, Ho+1, Wo+1, Cin).
    planes = [xp[:, pr::2, pc::2, :] for pr in range(2) for pc in range(2)]
    Hh, Wh = Ho + 1, Wo + 1

    w2 = w_hwio.reshape(KH * KW, Cin, Cout).astype(jnp.bfloat16)
    w_p = jnp.pad(w2, ((0, 0), (0, 0), (0, CP - Cout)))          # (9, Cin, CP)
    b_p = jnp.pad(bias.astype(jnp.float32), (0, CP - Cout)).reshape(1, CP)

    plane_spec = pl.BlockSpec((None, Hh, Wh, Cin), lambda b, s: (b, 0, 0, 0))
    out_nhwc = pl.pallas_call(
        functools.partial(_legacy_stem_kernel, ksize=KH),
        out_shape=jax.ShapeDtypeStruct((B, Ho, Wo, CP), jnp.bfloat16),
        grid=(B, Ho // SH),
        in_specs=[plane_spec, plane_spec, plane_spec, plane_spec,
                  pl.BlockSpec((KH * KW, Cin, CP), lambda b, s: (0, 0, 0)),
                  pl.BlockSpec((1, CP), lambda b, s: (0, 0))],
        out_specs=pl.BlockSpec((None, SH, Wo, CP), lambda b, s: (b, s, 0, 0)),
        compiler_params=pltpu.CompilerParams(
            dimension_semantics=("parallel", "parallel"),
            vmem_limit_bytes=32 * 1024 * 1024),
    )(*planes, w_p, b_p)

    # Drop channel padding; return NCHW f32 to match the legacy float() model.
    # (A real consumer would consume the NHWC bf16 kernel output directly.)
    out = out_nhwc[..., :Cout].astype(jnp.float32)
    return jnp.transpose(out, (0, 3, 1, 2))


if __name__ == "__main__":
    key = jax.random.PRNGKey(0)
    kx, kw, kb = jax.random.split(key, 3)

    # Small image-like input consistent with a GoogLeNet-style model (NCHW).
    B, Cin, H, W = 2, 3, 16, 16
    Cout, K = 16, 3

    x = jax.random.normal(kx, (B, Cin, H, W), jnp.float32)
    w = jax.random.normal(kw, (K, K, Cin, Cout), jnp.float32) * 0.1   # HWIO
    b = jax.random.normal(kb, (Cout,), jnp.float32) * 0.1

    # strip_rows=4 -> grid (B, Ho/4) = (2, 2): exercises the strip tiling.
    fwd = jax.jit(functools.partial(legacy_model_forward, strip_rows=4))
    out = jax.block_until_ready(fwd(x, w, b))

    # Pure-JAX f32 reference (conv + bias + relu + 2x2 maxpool).
    ref = jax.lax.conv_general_dilated(
        x, jnp.transpose(w, (3, 2, 0, 1)),            # OIHW
        window_strides=(1, 1), padding="SAME",
        dimension_numbers=("NCHW", "OIHW", "NCHW"))
    ref = jnp.maximum(ref + b[None, :, None, None], 0.0)
    ref = jax.lax.reduce_window(ref, -jnp.inf, jax.lax.max,
                                (1, 1, 2, 2), (1, 1, 2, 2), "VALID")

    assert out.shape == (B, Cout, H // 2, W // 2)
    # Tolerance accounts for bf16 MXU inputs + bf16 kernel output (accumulation
    # and epilogue stay f32) vs the pure-f32 reference.
    assert jnp.allclose(out, ref, atol=4e-2, rtol=4e-2), \
        float(jnp.max(jnp.abs(out - ref)))

    print("KERNEL_OK")
</pallas_src>

<mosaic_0001>
module attributes {stable_mosaic.version = 11 : i64} {
  func.func @_legacy_stem_kernel(%arg0: i32, %arg1: i32, %arg2: memref<1x9x9x3xbf16, #tpu.memory_space<vmem>>, %arg3: memref<1x9x9x3xbf16, #tpu.memory_space<vmem>>, %arg4: memref<1x9x9x3xbf16, #tpu.memory_space<vmem>>, %arg5: memref<1x9x9x3xbf16, #tpu.memory_space<vmem>>, %arg6: memref<9x3x128xbf16, #tpu.memory_space<vmem>>, %arg7: memref<1x128xf32, #tpu.memory_space<vmem>>, %arg8: memref<1x4x8x128xbf16, #tpu.memory_space<vmem>>) attributes {dimension_semantics = [#tpu.dimension_semantics<parallel>, #tpu.dimension_semantics<parallel>], iteration_bounds = array<i64: 2, 2>, scalar_prefetch = 0 : i64, scratch_operands = 0 : i64, tpu.core_type = #tpu.core_type<tc>, window_params = [{transform_indices = @transform_0, window_bounds = array<i64: 1, 9, 9, 3>}, {transform_indices = @transform_1, window_bounds = array<i64: 1, 9, 9, 3>}, {transform_indices = @transform_2, window_bounds = array<i64: 1, 9, 9, 3>}, {transform_indices = @transform_3, window_bounds = array<i64: 1, 9, 9, 3>}, {pipeline_mode = #tpu.pipeline_mode<synchronous>, transform_indices = @transform_4, window_bounds = array<i64: 9, 3, 128>}, {pipeline_mode = #tpu.pipeline_mode<synchronous>, transform_indices = @transform_5, window_bounds = array<i64: 1, 128>}, {transform_indices = @transform_6, window_bounds = array<i64: 1, 4, 8, 128>}]} {
    %c4_i32 = arith.constant 4 : i32
    %0 = arith.muli %arg1, %c4_i32 : i32
    %1 = tpu.assume_multiple %0, 4 : i32
    %c0_i32 = arith.constant 0 : i32
    %2 = arith.addi %1, %c0_i32 : i32
    %c0 = arith.constant 0 : index
    %3 = arith.index_cast %2 : i32 to index
    %c0_0 = arith.constant 0 : index
    %c0_1 = arith.constant 0 : index
    %4 = vector.load %arg2[%c0, %3, %c0_0, %c0_1] : memref<1x9x9x3xbf16, #tpu.memory_space<vmem>>, vector<1x4x8x3xbf16>
    %5 = vector.shape_cast %4 : vector<1x4x8x3xbf16> to vector<4x8x3xbf16>
    %6 = vector.shape_cast %5 : vector<4x8x3xbf16> to vector<32x3xbf16>
    %c0_2 = arith.constant 0 : index
    %c0_3 = arith.constant 0 : index
    %c0_4 = arith.constant 0 : index
    %7 = vector.load %arg6[%c0_2, %c0_3, %c0_4] : memref<9x3x128xbf16, #tpu.memory_space<vmem>>, vector<1x3x128xbf16>
    %8 = vector.shape_cast %7 : vector<1x3x128xbf16> to vector<3x128xbf16>
    %cst = arith.constant dense<0.000000e+00> : vector<32x128xf32>
    %9 = tpu.matmul %6, %8, %cst {dimension_numbers = #tpu.dot_dimension_numbers<[1], [0], [0], [1], [0, 0, 1, 1], [], []>} : vector<32x3xbf16>, vector<3x128xbf16>, vector<32x128xf32> -> vector<32x128xf32>
    %c0_i32_5 = arith.constant 0 : i32
    %10 = arith.addi %1, %c0_i32_5 : i32
    %c0_6 = arith.constant 0 : index
    %11 = arith.index_cast %10 : i32 to index
    %c0_7 = arith.constant 0 : index
    %c0_8 = arith.constant 0 : index
    %12 = vector.load %arg3[%c0_6, %11, %c0_7, %c0_8] : memref<1x9x9x3xbf16, #tpu.memory_space<vmem>>, vector<1x4x8x3xbf16>
    %13 = vector.shape_cast %12 : vector<1x4x8x3xbf16> to vector<4x8x3xbf16>
    %14 = vector.shape_cast %13 : vector<4x8x3xbf16> to vector<32x3xbf16>
    %c1 = arith.constant 1 : index
    %c0_9 = arith.constant 0 : index
    %c0_10 = arith.constant 0 : index
    %15 = vector.load %arg6[%c1, %c0_9, %c0_10] : memref<9x3x128xbf16, #tpu.memory_space<vmem>>, vector<1x3x128xbf16>
    %16 = vector.shape_cast %15 : vector<1x3x128xbf16> to vector<3x128xbf16>
    %cst_11 = arith.constant dense<0.000000e+00> : vector<32x128xf32>
    %17 = tpu.matmul %14, %16, %cst_11 {dimension_numbers = #tpu.dot_dimension_numbers<[1], [0], [0], [1], [0, 0, 1, 1], [], []>} : vector<32x3xbf16>, vector<3x128xbf16>, vector<32x128xf32> -> vector<32x128xf32>
    %18 = arith.addf %9, %17 : vector<32x128xf32>
    %c0_i32_12 = arith.constant 0 : i32
    %19 = arith.addi %1, %c0_i32_12 : i32
    %c0_13 = arith.constant 0 : index
    %20 = arith.index_cast %19 : i32 to index
    %c1_14 = arith.constant 1 : index
    %c0_15 = arith.constant 0 : index
    %21 = vector.load %arg2[%c0_13, %20, %c1_14, %c0_15] : memref<1x9x9x3xbf16, #tpu.memory_space<vmem>>, vector<1x4x8x3xbf16>
    %22 = vector.shape_cast %21 : vector<1x4x8x3xbf16> to vector<4x8x3xbf16>
    %23 = vector.shape_cast %22 : vector<4x8x3xbf16> to vector<32x3xbf16>
    %c2 = arith.constant 2 : index
    %c0_16 = arith.constant 0 : index
    %c0_17 = arith.constant 0 : index
    %24 = vector.load %arg6[%c2, %c0_16, %c0_17] : memref<9x3x128xbf16, #tpu.memory_space<vmem>>, vector<1x3x128xbf16>
    %25 = vector.shape_cast %24 : vector<1x3x128xbf16> to vector<3x128xbf16>
    %cst_18 = arith.constant dense<0.000000e+00> : vector<32x128xf32>
    %26 = tpu.matmul %23, %25, %cst_18 {dimension_numbers = #tpu.dot_dimension_numbers<[1], [0], [0], [1], [0, 0, 1, 1], [], []>} : vector<32x3xbf16>, vector<3x128xbf16>, vector<32x128xf32> -> vector<32x128xf32>
    %27 = arith.addf %18, %26 : vector<32x128xf32>
    %c0_i32_19 = arith.constant 0 : i32
    %28 = arith.addi %1, %c0_i32_19 : i32
    %c0_20 = arith.constant 0 : index
    %29 = arith.index_cast %28 : i32 to index
    %c0_21 = arith.constant 0 : index
    %c0_22 = arith.constant 0 : index
    %30 = vector.load %arg4[%c0_20, %29, %c0_21, %c0_22] : memref<1x9x9x3xbf16, #tpu.memory_space<vmem>>, vector<1x4x8x3xbf16>
    %31 = vector.shape_cast %30 : vector<1x4x8x3xbf16> to vector<4x8x3xbf16>
    %32 = vector.shape_cast %31 : vector<4x8x3xbf16> to vector<32x3xbf16>
    %c3 = arith.constant 3 : index
    %c0_23 = arith.constant 0 : index
    %c0_24 = arith.constant 0 : index
    %33 = vector.load %arg6[%c3, %c0_23, %c0_24] : memref<9x3x128xbf16, #tpu.memory_space<vmem>>, vector<1x3x128xbf16>
    %34 = vector.shape_cast %33 : vector<1x3x128xbf16> to vector<3x128xbf16>
    %cst_25 = arith.constant dense<0.000000e+00> : vector<32x128xf32>
    %35 = tpu.matmul %32, %34, %cst_25 {dimension_numbers = #tpu.dot_dimension_numbers<[1], [0], [0], [1], [0, 0, 1, 1], [], []>} : vector<32x3xbf16>, vector<3x128xbf16>, vector<32x128xf32> -> vector<32x128xf32>
    %36 = arith.addf %27, %35 : vector<32x128xf32>
    %c0_i32_26 = arith.constant 0 : i32
    %37 = arith.addi %1, %c0_i32_26 : i32
    %c0_27 = arith.constant 0 : index
    %38 = arith.index_cast %37 : i32 to index
    %c0_28 = arith.constant 0 : index
    %c0_29 = arith.constant 0 : index
    %39 = vector.load %arg5[%c0_27, %38, %c0_28, %c0_29] : memref<1x9x9x3xbf16, #tpu.memory_space<vmem>>, vector<1x4x8x3xbf16>
    %40 = vector.shape_cast %39 : vector<1x4x8x3xbf16> to vector<4x8x3xbf16>
    %41 = vector.shape_cast %40 : vector<4x8x3xbf16> to vector<32x3xbf16>
    %c4 = arith.constant 4 : index
    %c0_30 = arith.constant 0 : index
    %c0_31 = arith.constant 0 : index
    %42 = vector.load %arg6[%c4, %c0_30, %c0_31] : memref<9x3x128xbf16, #tpu.memory_space<vmem>>, vector<1x3x128xbf16>
    %43 = vector.shape_cast %42 : vector<1x3x128xbf16> to vector<3x128xbf16>
    %cst_32 = arith.constant dense<0.000000e+00> : vector<32x128xf32>
    %44 = tpu.matmul %41, %43, %cst_32 {dimension_numbers = #tpu.dot_dimension_numbers<[1], [0], [0], [1], [0, 0, 1, 1], [], []>} : vector<32x3xbf16>, vector<3x128xbf16>, vector<32x128xf32> -> vector<32x128xf32>
    %45 = arith.addf %36, %44 : vector<32x128xf32>
    %c0_i32_33 = arith.constant 0 : i32
    %46 = arith.addi %1, %c0_i32_33 : i32
    %c0_34 = arith.constant 0 : index
    %47 = arith.index_cast %46 : i32 to index
    %c1_35 = arith.constant 1 : index
    %c0_36 = arith.constant 0 : index
    %48 = vector.load %arg4[%c0_34, %47, %c1_35, %c0_36] : memref<1x9x9x3xbf16, #tpu.memory_space<vmem>>, vector<1x4x8x3xbf16>
    %49 = vector.shape_cast %48 : vector<1x4x8x3xbf16> to vector<4x8x3xbf16>
    %50 = vector.shape_cast %49 : vector<4x8x3xbf16> to vector<32x3xbf16>
    %c5 = arith.constant 5 : index
    %c0_37 = arith.constant 0 : index
    %c0_38 = arith.constant 0 : index
    %51 = vector.load %arg6[%c5, %c0_37, %c0_38] : memref<9x3x128xbf16, #tpu.memory_space<vmem>>, vector<1x3x128xbf16>
    %52 = vector.shape_cast %51 : vector<1x3x128xbf16> to vector<3x128xbf16>
    %cst_39 = arith.constant dense<0.000000e+00> : vector<32x128xf32>
    %53 = tpu.matmul %50, %52, %cst_39 {dimension_numbers = #tpu.dot_dimension_numbers<[1], [0], [0], [1], [0, 0, 1, 1], [], []>} : vector<32x3xbf16>, vector<3x128xbf16>, vector<32x128xf32> -> vector<32x128xf32>
    %54 = arith.addf %45, %53 : vector<32x128xf32>
    %c1_i32 = arith.constant 1 : i32
    %55 = arith.addi %1, %c1_i32 : i32
    %c0_40 = arith.constant 0 : index
    %56 = arith.index_cast %55 : i32 to index
    %c0_41 = arith.constant 0 : index
    %c0_42 = arith.constant 0 : index
    %57 = vector.load %arg2[%c0_40, %56, %c0_41, %c0_42] : memref<1x9x9x3xbf16, #tpu.memory_space<vmem>>, vector<1x4x8x3xbf16>
    %58 = vector.shape_cast %57 : vector<1x4x8x3xbf16> to vector<4x8x3xbf16>
    %59 = vector.shape_cast %58 : vector<4x8x3xbf16> to vector<32x3xbf16>
    %c6 = arith.constant 6 : index
    %c0_43 = arith.constant 0 : index
    %c0_44 = arith.constant 0 : index
    %60 = vector.load %arg6[%c6, %c0_43, %c0_44] : memref<9x3x128xbf16, #tpu.memory_space<vmem>>, vector<1x3x128xbf16>
    %61 = vector.shape_cast %60 : vector<1x3x128xbf16> to vector<3x128xbf16>
    %cst_45 = arith.constant dense<0.000000e+00> : vector<32x128xf32>
    %62 = tpu.matmul %59, %61, %cst_45 {dimension_numbers = #tpu.dot_dimension_numbers<[1], [0], [0], [1], [0, 0, 1, 1], [], []>} : vector<32x3xbf16>, vector<3x128xbf16>, vector<32x128xf32> -> vector<32x128xf32>
    %63 = arith.addf %54, %62 : vector<32x128xf32>
    %c1_i32_46 = arith.constant 1 : i32
    %64 = arith.addi %1, %c1_i32_46 : i32
    %c0_47 = arith.constant 0 : index
    %65 = arith.index_cast %64 : i32 to index
    %c0_48 = arith.constant 0 : index
    %c0_49 = arith.constant 0 : index
    %66 = vector.load %arg3[%c0_47, %65, %c0_48, %c0_49] : memref<1x9x9x3xbf16, #tpu.memory_space<vmem>>, vector<1x4x8x3xbf16>
    %67 = vector.shape_cast %66 : vector<1x4x8x3xbf16> to vector<4x8x3xbf16>
    %68 = vector.shape_cast %67 : vector<4x8x3xbf16> to vector<32x3xbf16>
    %c7 = arith.constant 7 : index
    %c0_50 = arith.constant 0 : index
    %c0_51 = arith.constant 0 : index
    %69 = vector.load %arg6[%c7, %c0_50, %c0_51] : memref<9x3x128xbf16, #tpu.memory_space<vmem>>, vector<1x3x128xbf16>
    %70 = vector.shape_cast %69 : vector<1x3x128xbf16> to vector<3x128xbf16>
    %cst_52 = arith.constant dense<0.000000e+00> : vector<32x128xf32>
    %71 = tpu.matmul %68, %70, %cst_52 {dimension_numbers = #tpu.dot_dimension_numbers<[1], [0], [0], [1], [0, 0, 1, 1], [], []>} : vector<32x3xbf16>, vector<3x128xbf16>, vector<32x128xf32> -> vector<32x128xf32>
    %72 = arith.addf %63, %71 : vector<32x128xf32>
    %c1_i32_53 = arith.constant 1 : i32
    %73 = arith.addi %1, %c1_i32_53 : i32
    %c0_54 = arith.constant 0 : index
    %74 = arith.index_cast %73 : i32 to index
    %c1_55 = arith.constant 1 : index
    %c0_56 = arith.constant 0 : index
    %75 = vector.load %arg2[%c0_54, %74, %c1_55, %c0_56] : memref<1x9x9x3xbf16, #tpu.memory_space<vmem>>, vector<1x4x8x3xbf16>
    %76 = vector.shape_cast %75 : vector<1x4x8x3xbf16> to vector<4x8x3xbf16>
    %77 = vector.shape_cast %76 : vector<4x8x3xbf16> to vector<32x3xbf16>
    %c8 = arith.constant 8 : index
    %c0_57 = arith.constant 0 : index
    %c0_58 = arith.constant 0 : index
    %78 = vector.load %arg6[%c8, %c0_57, %c0_58] : memref<9x3x128xbf16, #tpu.memory_space<vmem>>, vector<1x3x128xbf16>
    %79 = vector.shape_cast %78 : vector<1x3x128xbf16> to vector<3x128xbf16>
    %cst_59 = arith.constant dense<0.000000e+00> : vector<32x128xf32>
    %80 = tpu.matmul %77, %79, %cst_59 {dimension_numbers = #tpu.dot_dimension_numbers<[1], [0], [0], [1], [0, 0, 1, 1], [], []>} : vector<32x3xbf16>, vector<3x128xbf16>, vector<32x128xf32> -> vector<32x128xf32>
    %81 = arith.addf %72, %80 : vector<32x128xf32>
    %c0_i32_60 = arith.constant 0 : i32
    %82 = arith.addi %1, %c0_i32_60 : i32
    %c0_61 = arith.constant 0 : index
    %83 = arith.index_cast %82 : i32 to index
    %c0_62 = arith.constant 0 : index
    %c0_63 = arith.constant 0 : index
    %84 = vector.load %arg3[%c0_61, %83, %c0_62, %c0_63] : memref<1x9x9x3xbf16, #tpu.memory_space<vmem>>, vector<1x4x8x3xbf16>
    %85 = vector.shape_cast %84 : vector<1x4x8x3xbf16> to vector<4x8x3xbf16>
    %86 = vector.shape_cast %85 : vector<4x8x3xbf16> to vector<32x3xbf16>
    %c0_64 = arith.constant 0 : index
    %c0_65 = arith.constant 0 : index
    %c0_66 = arith.constant 0 : index
    %87 = vector.load %arg6[%c0_64, %c0_65, %c0_66] : memref<9x3x128xbf16, #tpu.memory_space<vmem>>, vector<1x3x128xbf16>
    %88 = vector.shape_cast %87 : vector<1x3x128xbf16> to vector<3x128xbf16>
    %cst_67 = arith.constant dense<0.000000e+00> : vector<32x128xf32>
    %89 = tpu.matmul %86, %88, %cst_67 {dimension_numbers = #tpu.dot_dimension_numbers<[1], [0], [0], [1], [0, 0, 1, 1], [], []>} : vector<32x3xbf16>, vector<3x128xbf16>, vector<32x128xf32> -> vector<32x128xf32>
    %c0_i32_68 = arith.constant 0 : i32
    %90 = arith.addi %1, %c0_i32_68 : i32
    %c0_69 = arith.constant 0 : index
    %91 = arith.index_cast %90 : i32 to index
    %c1_70 = arith.constant 1 : index
    %c0_71 = arith.constant 0 : index
    %92 = vector.load %arg2[%c0_69, %91, %c1_70, %c0_71] : memref<1x9x9x3xbf16, #tpu.memory_space<vmem>>, vector<1x4x8x3xbf16>
    %93 = vector.shape_cast %92 : vector<1x4x8x3xbf16> to vector<4x8x3xbf16>
    %94 = vector.shape_cast %93 : vector<4x8x3xbf16> to vector<32x3xbf16>
    %c1_72 = arith.constant 1 : index
    %c0_73 = arith.constant 0 : index
    %c0_74 = arith.constant 0 : index
    %95 = vector.load %arg6[%c1_72, %c0_73, %c0_74] : memref<9x3x128xbf16, #tpu.memory_space<vmem>>, vector<1x3x128xbf16>
    %96 = vector.shape_cast %95 : vector<1x3x128xbf16> to vector<3x128xbf16>
    %cst_75 = arith.constant dense<0.000000e+00> : vector<32x128xf32>
    %97 = tpu.matmul %94, %96, %cst_75 {dimension_numbers = #tpu.dot_dimension_numbers<[1], [0], [0], [1], [0, 0, 1, 1], [], []>} : vector<32x3xbf16>, vector<3x128xbf16>, vector<32x128xf32> -> vector<32x128xf32>
    %98 = arith.addf %89, %97 : vector<32x128xf32>
    %c0_i32_76 = arith.constant 0 : i32
    %99 = arith.addi %1, %c0_i32_76 : i32
    %c0_77 = arith.constant 0 : index
    %100 = arith.index_cast %99 : i32 to index
    %c1_78 = arith.constant 1 : index
    %c0_79 = arith.constant 0 : index
    %101 = vector.load %arg3[%c0_77, %100, %c1_78, %c0_79] : memref<1x9x9x3xbf16, #tpu.memory_space<vmem>>, vector<1x4x8x3xbf16>
    %102 = vector.shape_cast %101 : vector<1x4x8x3xbf16> to vector<4x8x3xbf16>
    %103 = vector.shape_cast %102 : vector<4x8x3xbf16> to vector<32x3xbf16>
    %c2_80 = arith.constant 2 : index
    %c0_81 = arith.constant 0 : index
    %c0_82 = arith.constant 0 : index
    %104 = vector.load %arg6[%c2_80, %c0_81, %c0_82] : memref<9x3x128xbf16, #tpu.memory_space<vmem>>, vector<1x3x128xbf16>
    %105 = vector.shape_cast %104 : vector<1x3x128xbf16> to vector<3x128xbf16>
    %cst_83 = arith.constant dense<0.000000e+00> : vector<32x128xf32>
    %106 = tpu.matmul %103, %105, %cst_83 {dimension_numbers = #tpu.dot_dimension_numbers<[1], [0], [0], [1], [0, 0, 1, 1], [], []>} : vector<32x3xbf16>, vector<3x128xbf16>, vector<32x128xf32> -> vector<32x128xf32>
    %107 = arith.addf %98, %106 : vector<32x128xf32>
    %c0_i32_84 = arith.constant 0 : i32
    %108 = arith.addi %1, %c0_i32_84 : i32
    %c0_85 = arith.constant 0 : index
    %109 = arith.index_cast %108 : i32 to index
    %c0_86 = arith.constant 0 : index
    %c0_87 = arith.constant 0 : index
    %110 = vector.load %arg5[%c0_85, %109, %c0_86, %c0_87] : memref<1x9x9x3xbf16, #tpu.memory_space<vmem>>, vector<1x4x8x3xbf16>
    %111 = vector.shape_cast %110 : vector<1x4x8x3xbf16> to vector<4x8x3xbf16>
    %112 = vector.shape_cast %111 : vector<4x8x3xbf16> to vector<32x3xbf16>
    %c3_88 = arith.constant 3 : index
    %c0_89 = arith.constant 0 : index
    %c0_90 = arith.constant 0 : index
    %113 = vector.load %arg6[%c3_88, %c0_89, %c0_90] : memref<9x3x128xbf16, #tpu.memory_space<vmem>>, vector<1x3x128xbf16>
    %114 = vector.shape_cast %113 : vector<1x3x128xbf16> to vector<3x128xbf16>
    %cst_91 = arith.constant dense<0.000000e+00> : vector<32x128xf32>
    %115 = tpu.matmul %112, %114, %cst_91 {dimension_numbers = #tpu.dot_dimension_numbers<[1], [0], [0], [1], [0, 0, 1, 1], [], []>} : vector<32x3xbf16>, vector<3x128xbf16>, vector<32x128xf32> -> vector<32x128xf32>
    %116 = arith.addf %107, %115 : vector<32x128xf32>
    %c0_i32_92 = arith.constant 0 : i32
    %117 = arith.addi %1, %c0_i32_92 : i32
    %c0_93 = arith.constant 0 : index
    %118 = arith.index_cast %117 : i32 to index
    %c1_94 = arith.constant 1 : index
    %c0_95 = arith.constant 0 : index
    %119 = vector.load %arg4[%c0_93, %118, %c1_94, %c0_95] : memref<1x9x9x3xbf16, #tpu.memory_space<vmem>>, vector<1x4x8x3xbf16>
    %120 = vector.shape_cast %119 : vector<1x4x8x3xbf16> to vector<4x8x3xbf16>
    %121 = vector.shape_cast %120 : vector<4x8x3xbf16> to vector<32x3xbf16>
    %c4_96 = arith.constant 4 : index
    %c0_97 = arith.constant 0 : index
    %c0_98 = arith.constant 0 : index
    %122 = vector.load %arg6[%c4_96, %c0_97, %c0_98] : memref<9x3x128xbf16, #tpu.memory_space<vmem>>, vector<1x3x128xbf16>
    %123 = vector.shape_cast %122 : vector<1x3x128xbf16> to vector<3x128xbf16>
    %cst_99 = arith.constant dense<0.000000e+00> : vector<32x128xf32>
    %124 = tpu.matmul %121, %123, %cst_99 {dimension_numbers = #tpu.dot_dimension_numbers<[1], [0], [0], [1], [0, 0, 1, 1], [], []>} : vector<32x3xbf16>, vector<3x128xbf16>, vector<32x128xf32> -> vector<32x128xf32>
    %125 = arith.addf %116, %124 : vector<32x128xf32>
    %c0_i32_100 = arith.constant 0 : i32
    %126 = arith.addi %1, %c0_i32_100 : i32
    %c0_101 = arith.constant 0 : index
    %127 = arith.index_cast %126 : i32 to index
    %c1_102 = arith.constant 1 : index
    %c0_103 = arith.constant 0 : index
    %128 = vector.load %arg5[%c0_101, %127, %c1_102, %c0_103] : memref<1x9x9x3xbf16, #tpu.memory_space<vmem>>, vector<1x4x8x3xbf16>
    %129 = vector.shape_cast %128 : vector<1x4x8x3xbf16> to vector<4x8x3xbf16>
    %130 = vector.shape_cast %129 : vector<4x8x3xbf16> to vector<32x3xbf16>
    %c5_104 = arith.constant 5 : index
    %c0_105 = arith.constant 0 : index
    %c0_106 = arith.constant 0 : index
    %131 = vector.load %arg6[%c5_104, %c0_105, %c0_106] : memref<9x3x128xbf16, #tpu.memory_space<vmem>>, vector<1x3x128xbf16>
    %132 = vector.shape_cast %131 : vector<1x3x128xbf16> to vector<3x128xbf16>
    %cst_107 = arith.constant dense<0.000000e+00> : vector<32x128xf32>
    %133 = tpu.matmul %130, %132, %cst_107 {dimension_numbers = #tpu.dot_dimension_numbers<[1], [0], [0], [1], [0, 0, 1, 1], [], []>} : vector<32x3xbf16>, vector<3x128xbf16>, vector<32x128xf32> -> vector<32x128xf32>
    %134 = arith.addf %125, %133 : vector<32x128xf32>
    %c1_i32_108 = arith.constant 1 : i32
    %135 = arith.addi %1, %c1_i32_108 : i32
    %c0_109 = arith.constant 0 : index
    %136 = arith.index_cast %135 : i32 to index
    %c0_110 = arith.constant 0 : index
    %c0_111 = arith.constant 0 : index
    %137 = vector.load %arg3[%c0_109, %136, %c0_110, %c0_111] : memref<1x9x9x3xbf16, #tpu.memory_space<vmem>>, vector<1x4x8x3xbf16>
    %138 = vector.shape_cast %137 : vector<1x4x8x3xbf16> to vector<4x8x3xbf16>
    %139 = vector.shape_cast %138 : vector<4x8x3xbf16> to vector<32x3xbf16>
    %c6_112 = arith.constant 6 : index
    %c0_113 = arith.constant 0 : index
    %c0_114 = arith.constant 0 : index
    %140 = vector.load %arg6[%c6_112, %c0_113, %c0_114] : memref<9x3x128xbf16, #tpu.memory_space<vmem>>, vector<1x3x128xbf16>
    %141 = vector.shape_cast %140 : vector<1x3x128xbf16> to vector<3x128xbf16>
    %cst_115 = arith.constant dense<0.000000e+00> : vector<32x128xf32>
    %142 = tpu.matmul %139, %141, %cst_115 {dimension_numbers = #tpu.dot_dimension_numbers<[1], [0], [0], [1], [0, 0, 1, 1], [], []>} : vector<32x3xbf16>, vector<3x128xbf16>, vector<32x128xf32> -> vector<32x128xf32>
    %143 = arith.addf %134, %142 : vector<32x128xf32>
    %c1_i32_116 = arith.constant 1 : i32
    %144 = arith.addi %1, %c1_i32_116 : i32
    %c0_117 = arith.constant 0 : index
    %145 = arith.index_cast %144 : i32 to index
    %c1_118 = arith.constant 1 : index
    %c0_119 = arith.constant 0 : index
    %146 = vector.load %arg2[%c0_117, %145, %c1_118, %c0_119] : memref<1x9x9x3xbf16, #tpu.memory_space<vmem>>, vector<1x4x8x3xbf16>
    %147 = vector.shape_cast %146 : vector<1x4x8x3xbf16> to vector<4x8x3xbf16>
    %148 = vector.shape_cast %147 : vector<4x8x3xbf16> to vector<32x3xbf16>
    %c7_120 = arith.constant 7 : index
    %c0_121 = arith.constant 0 : index
    %c0_122 = arith.constant 0 : index
    %149 = vector.load %arg6[%c7_120, %c0_121, %c0_122] : memref<9x3x128xbf16, #tpu.memory_space<vmem>>, vector<1x3x128xbf16>
    %150 = vector.shape_cast %149 : vector<1x3x128xbf16> to vector<3x128xbf16>
    %cst_123 = arith.constant dense<0.000000e+00> : vector<32x128xf32>
    %151 = tpu.matmul %148, %150, %cst_123 {dimension_numbers = #tpu.dot_dimension_numbers<[1], [0], [0], [1], [0, 0, 1, 1], [], []>} : vector<32x3xbf16>, vector<3x128xbf16>, vector<32x128xf32> -> vector<32x128xf32>
    %152 = arith.addf %143, %151 : vector<32x128xf32>
    %c1_i32_124 = arith.constant 1 : i32
    %153 = arith.addi %1, %c1_i32_124 : i32
    %c0_125 = arith.constant 0 : index
    %154 = arith.index_cast %153 : i32 to index
    %c1_126 = arith.constant 1 : index
    %c0_127 = arith.constant 0 : index
    %155 = vector.load %arg3[%c0_125, %154, %c1_126, %c0_127] : memref<1x9x9x3xbf16, #tpu.memory_space<vmem>>, vector<1x4x8x3xbf16>
    %156 = vector.shape_cast %155 : vector<1x4x8x3xbf16> to vector<4x8x3xbf16>
    %157 = vector.shape_cast %156 : vector<4x8x3xbf16> to vector<32x3xbf16>
    %c8_128 = arith.constant 8 : index
    %c0_129 = arith.constant 0 : index
    %c0_130 = arith.constant 0 : index
    %158 = vector.load %arg6[%c8_128, %c0_129, %c0_130] : memref<9x3x128xbf16, #tpu.memory_space<vmem>>, vector<1x3x128xbf16>
    %159 = vector.shape_cast %158 : vector<1x3x128xbf16> to vector<3x128xbf16>
    %cst_131 = arith.constant dense<0.000000e+00> : vector<32x128xf32>
    %160 = tpu.matmul %157, %159, %cst_131 {dimension_numbers = #tpu.dot_dimension_numbers<[1], [0], [0], [1], [0, 0, 1, 1], [], []>} : vector<32x3xbf16>, vector<3x128xbf16>, vector<32x128xf32> -> vector<32x128xf32>
    %161 = arith.addf %152, %160 : vector<32x128xf32>
    %162 = arith.maximumf %81, %161 : vector<32x128xf32>
    %c0_i32_132 = arith.constant 0 : i32
    %163 = arith.addi %1, %c0_i32_132 : i32
    %c0_133 = arith.constant 0 : index
    %164 = arith.index_cast %163 : i32 to index
    %c0_134 = arith.constant 0 : index
    %c0_135 = arith.constant 0 : index
    %165 = vector.load %arg4[%c0_133, %164, %c0_134, %c0_135] : memref<1x9x9x3xbf16, #tpu.memory_space<vmem>>, vector<1x4x8x3xbf16>
    %166 = vector.shape_cast %165 : vector<1x4x8x3xbf16> to vector<4x8x3xbf16>
    %167 = vector.shape_cast %166 : vector<4x8x3xbf16> to vector<32x3xbf16>
    %c0_136 = arith.constant 0 : index
    %c0_137 = arith.constant 0 : index
    %c0_138 = arith.constant 0 : index
    %168 = vector.load %arg6[%c0_136, %c0_137, %c0_138] : memref<9x3x128xbf16, #tpu.memory_space<vmem>>, vector<1x3x128xbf16>
    %169 = vector.shape_cast %168 : vector<1x3x128xbf16> to vector<3x128xbf16>
    %cst_139 = arith.constant dense<0.000000e+00> : vector<32x128xf32>
    %170 = tpu.matmul %167, %169, %cst_139 {dimension_numbers = #tpu.dot_dimension_numbers<[1], [0], [0], [1], [0, 0, 1, 1], [], []>} : vector<32x3xbf16>, vector<3x128xbf16>, vector<32x128xf32> -> vector<32x128xf32>
    %c0_i32_140 = arith.constant 0 : i32
    %171 = arith.addi %1, %c0_i32_140 : i32
    %c0_141 = arith.constant 0 : index
    %172 = arith.index_cast %171 : i32 to index
    %c0_142 = arith.constant 0 : index
    %c0_143 = arith.constant 0 : index
    %173 = vector.load %arg5[%c0_141, %172, %c0_142, %c0_143] : memref<1x9x9x3xbf16, #tpu.memory_space<vmem>>, vector<1x4x8x3xbf16>
    %174 = vector.shape_cast %173 : vector<1x4x8x3xbf16> to vector<4x8x3xbf16>
    %175 = vector.shape_cast %174 : vector<4x8x3xbf16> to vector<32x3xbf16>
    %c1_144 = arith.constant 1 : index
    %c0_145 = arith.constant 0 : index
    %c0_146 = arith.constant 0 : index
    %176 = vector.load %arg6[%c1_144, %c0_145, %c0_146] : memref<9x3x128xbf16, #tpu.memory_space<vmem>>, vector<1x3x128xbf16>
    %177 = vector.shape_cast %176 : vector<1x3x128xbf16> to vector<3x128xbf16>
    %cst_147 = arith.constant dense<0.000000e+00> : vector<32x128xf32>
    %178 = tpu.matmul %175, %177, %cst_147 {dimension_numbers = #tpu.dot_dimension_numbers<[1], [0], [0], [1], [0, 0, 1, 1], [], []>} : vector<32x3xbf16>, vector<3x128xbf16>, vector<32x128xf32> -> vector<32x128xf32>
    %179 = arith.addf %170, %178 : vector<32x128xf32>
    %c0_i32_148 = arith.constant 0 : i32
    %180 = arith.addi %1, %c0_i32_148 : i32
    %c0_149 = arith.constant 0 : index
    %181 = arith.index_cast %180 : i32 to index
    %c1_150 = arith.constant 1 : index
    %c0_151 = arith.constant 0 : index
    %182 = vector.load %arg4[%c0_149, %181, %c1_150, %c0_151] : memref<1x9x9x3xbf16, #tpu.memory_space<vmem>>, vector<1x4x8x3xbf16>
    %183 = vector.shape_cast %182 : vector<1x4x8x3xbf16> to vector<4x8x3xbf16>
    %184 = vector.shape_cast %183 : vector<4x8x3xbf16> to vector<32x3xbf16>
    %c2_152 = arith.constant 2 : index
    %c0_153 = arith.constant 0 : index
    %c0_154 = arith.constant 0 : index
    %185 = vector.load %arg6[%c2_152, %c0_153, %c0_154] : memref<9x3x128xbf16, #tpu.memory_space<vmem>>, vector<1x3x128xbf16>
    %186 = vector.shape_cast %185 : vector<1x3x128xbf16> to vector<3x128xbf16>
    %cst_155 = arith.constant dense<0.000000e+00> : vector<32x128xf32>
    %187 = tpu.matmul %184, %186, %cst_155 {dimension_numbers = #tpu.dot_dimension_numbers<[1], [0], [0], [1], [0, 0, 1, 1], [], []>} : vector<32x3xbf16>, vector<3x128xbf16>, vector<32x128xf32> -> vector<32x128xf32>
    %188 = arith.addf %179, %187 : vector<32x128xf32>
    %c1_i32_156 = arith.constant 1 : i32
    %189 = arith.addi %1, %c1_i32_156 : i32
    %c0_157 = arith.constant 0 : index
    %190 = arith.index_cast %189 : i32 to index
    %c0_158 = arith.constant 0 : index
    %c0_159 = arith.constant 0 : index
    %191 = vector.load %arg2[%c0_157, %190, %c0_158, %c0_159] : memref<1x9x9x3xbf16, #tpu.memory_space<vmem>>, vector<1x4x8x3xbf16>
    %192 = vector.shape_cast %191 : vector<1x4x8x3xbf16> to vector<4x8x3xbf16>
    %193 = vector.shape_cast %192 : vector<4x8x3xbf16> to vector<32x3xbf16>
    %c3_160 = arith.constant 3 : index
    %c0_161 = arith.constant 0 : index
    %c0_162 = arith.constant 0 : index
    %194 = vector.load %arg6[%c3_160, %c0_161, %c0_162] : memref<9x3x128xbf16, #tpu.memory_space<vmem>>, vector<1x3x128xbf16>
    %195 = vector.shape_cast %194 : vector<1x3x128xbf16> to vector<3x128xbf16>
    %cst_163 = arith.constant dense<0.000000e+00> : vector<32x128xf32>
    %196 = tpu.matmul %193, %195, %cst_163 {dimension_numbers = #tpu.dot_dimension_numbers<[1], [0], [0], [1], [0, 0, 1, 1], [], []>} : vector<32x3xbf16>, vector<3x128xbf16>, vector<32x128xf32> -> vector<32x128xf32>
    %197 = arith.addf %188, %196 : vector<32x128xf32>
    %c1_i32_164 = arith.constant 1 : i32
    %198 = arith.addi %1, %c1_i32_164 : i32
    %c0_165 = arith.constant 0 : index
    %199 = arith.index_cast %198 : i32 to index
    %c0_166 = arith.constant 0 : index
    %c0_167 = arith.constant 0 : index
    %200 = vector.load %arg3[%c0_165, %199, %c0_166, %c0_167] : memref<1x9x9x3xbf16, #tpu.memory_space<vmem>>, vector<1x4x8x3xbf16>
    %201 = vector.shape_cast %200 : vector<1x4x8x3xbf16> to vector<4x8x3xbf16>
    %202 = vector.shape_cast %201 : vector<4x8x3xbf16> to vector<32x3xbf16>
    %c4_168 = arith.constant 4 : index
    %c0_169 = arith.constant 0 : index
    %c0_170 = arith.constant 0 : index
    %203 = vector.load %arg6[%c4_168, %c0_169, %c0_170] : memref<9x3x128xbf16, #tpu.memory_space<vmem>>, vector<1x3x128xbf16>
    %204 = vector.shape_cast %203 : vector<1x3x128xbf16> to vector<3x128xbf16>
    %cst_171 = arith.constant dense<0.000000e+00> : vector<32x128xf32>
    %205 = tpu.matmul %202, %204, %cst_171 {dimension_numbers = #tpu.dot_dimension_numbers<[1], [0], [0], [1], [0, 0, 1, 1], [], []>} : vector<32x3xbf16>, vector<3x128xbf16>, vector<32x128xf32> -> vector<32x128xf32>
    %206 = arith.addf %197, %205 : vector<32x128xf32>
    %c1_i32_172 = arith.constant 1 : i32
    %207 = arith.addi %1, %c1_i32_172 : i32
    %c0_173 = arith.constant 0 : index
    %208 = arith.index_cast %207 : i32 to index
    %c1_174 = arith.constant 1 : index
    %c0_175 = arith.constant 0 : index
    %209 = vector.load %arg2[%c0_173, %208, %c1_174, %c0_175] : memref<1x9x9x3xbf16, #tpu.memory_space<vmem>>, vector<1x4x8x3xbf16>
    %210 = vector.shape_cast %209 : vector<1x4x8x3xbf16> to vector<4x8x3xbf16>
    %211 = vector.shape_cast %210 : vector<4x8x3xbf16> to vector<32x3xbf16>
    %c5_176 = arith.constant 5 : index
    %c0_177 = arith.constant 0 : index
    %c0_178 = arith.constant 0 : index
    %212 = vector.load %arg6[%c5_176, %c0_177, %c0_178] : memref<9x3x128xbf16, #tpu.memory_space<vmem>>, vector<1x3x128xbf16>
    %213 = vector.shape_cast %212 : vector<1x3x128xbf16> to vector<3x128xbf16>
    %cst_179 = arith.constant dense<0.000000e+00> : vector<32x128xf32>
    %214 = tpu.matmul %211, %213, %cst_179 {dimension_numbers = #tpu.dot_dimension_numbers<[1], [0], [0], [1], [0, 0, 1, 1], [], []>} : vector<32x3xbf16>, vector<3x128xbf16>, vector<32x128xf32> -> vector<32x128xf32>
    %215 = arith.addf %206, %214 : vector<32x128xf32>
    %c1_i32_180 = arith.constant 1 : i32
    %216 = arith.addi %1, %c1_i32_180 : i32
    %c0_181 = arith.constant 0 : index
    %217 = arith.index_cast %216 : i32 to index
    %c0_182 = arith.constant 0 : index
    %c0_183 = arith.constant 0 : index
    %218 = vector.load %arg4[%c0_181, %217, %c0_182, %c0_183] : memref<1x9x9x3xbf16, #tpu.memory_space<vmem>>, vector<1x4x8x3xbf16>
    %219 = vector.shape_cast %218 : vector<1x4x8x3xbf16> to vector<4x8x3xbf16>
    %220 = vector.shape_cast %219 : vector<4x8x3xbf16> to vector<32x3xbf16>
    %c6_184 = arith.constant 6 : index
    %c0_185 = arith.constant 0 : index
    %c0_186 = arith.constant 0 : index
    %221 = vector.load %arg6[%c6_184, %c0_185, %c0_186] : memref<9x3x128xbf16, #tpu.memory_space<vmem>>, vector<1x3x128xbf16>
    %222 = vector.shape_cast %221 : vector<1x3x128xbf16> to vector<3x128xbf16>
    %cst_187 = arith.constant dense<0.000000e+00> : vector<32x128xf32>
    %223 = tpu.matmul %220, %222, %cst_187 {dimension_numbers = #tpu.dot_dimension_numbers<[1], [0], [0], [1], [0, 0, 1, 1], [], []>} : vector<32x3xbf16>, vector<3x128xbf16>, vector<32x128xf32> -> vector<32x128xf32>
    %224 = arith.addf %215, %223 : vector<32x128xf32>
    %c1_i32_188 = arith.constant 1 : i32
    %225 = arith.addi %1, %c1_i32_188 : i32
    %c0_189 = arith.constant 0 : index
    %226 = arith.index_cast %225 : i32 to index
    %c0_190 = arith.constant 0 : index
    %c0_191 = arith.constant 0 : index
    %227 = vector.load %arg5[%c0_189, %226, %c0_190, %c0_191] : memref<1x9x9x3xbf16, #tpu.memory_space<vmem>>, vector<1x4x8x3xbf16>
    %228 = vector.shape_cast %227 : vector<1x4x8x3xbf16> to vector<4x8x3xbf16>
    %229 = vector.shape_cast %228 : vector<4x8x3xbf16> to vector<32x3xbf16>
    %c7_192 = arith.constant 7 : index
    %c0_193 = arith.constant 0 : index
    %c0_194 = arith.constant 0 : index
    %230 = vector.load %arg6[%c7_192, %c0_193, %c0_194] : memref<9x3x128xbf16, #tpu.memory_space<vmem>>, vector<1x3x128xbf16>
    %231 = vector.shape_cast %230 : vector<1x3x128xbf16> to vector<3x128xbf16>
    %cst_195 = arith.constant dense<0.000000e+00> : vector<32x128xf32>
    %232 = tpu.matmul %229, %231, %cst_195 {dimension_numbers = #tpu.dot_dimension_numbers<[1], [0], [0], [1], [0, 0, 1, 1], [], []>} : vector<32x3xbf16>, vector<3x128xbf16>, vector<32x128xf32> -> vector<32x128xf32>
    %233 = arith.addf %224, %232 : vector<32x128xf32>
    %c1_i32_196 = arith.constant 1 : i32
    %234 = arith.addi %1, %c1_i32_196 : i32
    %c0_197 = arith.constant 0 : index
    %235 = arith.index_cast %234 : i32 to index
    %c1_198 = arith.constant 1 : index
    %c0_199 = arith.constant 0 : index
    %236 = vector.load %arg4[%c0_197, %235, %c1_198, %c0_199] : memref<1x9x9x3xbf16, #tpu.memory_space<vmem>>, vector<1x4x8x3xbf16>
    %237 = vector.shape_cast %236 : vector<1x4x8x3xbf16> to vector<4x8x3xbf16>
    %238 = vector.shape_cast %237 : vector<4x8x3xbf16> to vector<32x3xbf16>
    %c8_200 = arith.constant 8 : index
    %c0_201 = arith.constant 0 : index
    %c0_202 = arith.constant 0 : index
    %239 = vector.load %arg6[%c8_200, %c0_201, %c0_202] : memref<9x3x128xbf16, #tpu.memory_space<vmem>>, vector<1x3x128xbf16>
    %240 = vector.shape_cast %239 : vector<1x3x128xbf16> to vector<3x128xbf16>
    %cst_203 = arith.constant dense<0.000000e+00> : vector<32x128xf32>
    %241 = tpu.matmul %238, %240, %cst_203 {dimension_numbers = #tpu.dot_dimension_numbers<[1], [0], [0], [1], [0, 0, 1, 1], [], []>} : vector<32x3xbf16>, vector<3x128xbf16>, vector<32x128xf32> -> vector<32x128xf32>
    %242 = arith.addf %233, %241 : vector<32x128xf32>
    %243 = arith.maximumf %162, %242 : vector<32x128xf32>
    %c0_i32_204 = arith.constant 0 : i32
    %244 = arith.addi %1, %c0_i32_204 : i32
    %c0_205 = arith.constant 0 : index
    %245 = arith.index_cast %244 : i32 to index
    %c0_206 = arith.constant 0 : index
    %c0_207 = arith.constant 0 : index
    %246 = vector.load %arg5[%c0_205, %245, %c0_206, %c0_207] : memref<1x9x9x3xbf16, #tpu.memory_space<vmem>>, vector<1x4x8x3xbf16>
    %247 = vector.shape_cast %246 : vector<1x4x8x3xbf16> to vector<4x8x3xbf16>
    %248 = vector.shape_cast %247 : vector<4x8x3xbf16> to vector<32x3xbf16>
    %c0_208 = arith.constant 0 : index
    %c0_209 = arith.constant 0 : index
    %c0_210 = arith.constant 0 : index
    %249 = vector.load %arg6[%c0_208, %c0_209, %c0_210] : memref<9x3x128xbf16, #tpu.memory_space<vmem>>, vector<1x3x128xbf16>
    %250 = vector.shape_cast %249 : vector<1x3x128xbf16> to vector<3x128xbf16>
    %cst_211 = arith.constant dense<0.000000e+00> : vector<32x128xf32>
    %251 = tpu.matmul %248, %250, %cst_211 {dimension_numbers = #tpu.dot_dimension_numbers<[1], [0], [0], [1], [0, 0, 1, 1], [], []>} : vector<32x3xbf16>, vector<3x128xbf16>, vector<32x128xf32> -> vector<32x128xf32>
    %c0_i32_212 = arith.constant 0 : i32
    %252 = arith.addi %1, %c0_i32_212 : i32
    %c0_213 = arith.constant 0 : index
    %253 = arith.index_cast %252 : i32 to index
    %c1_214 = arith.constant 1 : index
    %c0_215 = arith.constant 0 : index
    %254 = vector.load %arg4[%c0_213, %253, %c1_214, %c0_215] : memref<1x9x9x3xbf16, #tpu.memory_space<vmem>>, vector<1x4x8x3xbf16>
    %255 = vector.shape_cast %254 : vector<1x4x8x3xbf16> to vector<4x8x3xbf16>
    %256 = vector.shape_cast %255 : vector<4x8x3xbf16> to vector<32x3xbf16>
    %c1_216 = arith.constant 1 : index
    %c0_217 = arith.constant 0 : index
    %c0_218 = arith.constant 0 : index
    %257 = vector.load %arg6[%c1_216, %c0_217, %c0_218] : memref<9x3x128xbf16, #tpu.memory_space<vmem>>, vector<1x3x128xbf16>
    %258 = vector.shape_cast %257 : vector<1x3x128xbf16> to vector<3x128xbf16>
    %cst_219 = arith.constant dense<0.000000e+00> : vector<32x128xf32>
    %259 = tpu.matmul %256, %258, %cst_219 {dimension_numbers = #tpu.dot_dimension_numbers<[1], [0], [0], [1], [0, 0, 1, 1], [], []>} : vector<32x3xbf16>, vector<3x128xbf16>, vector<32x128xf32> -> vector<32x128xf32>
    %260 = arith.addf %251, %259 : vector<32x128xf32>
    %c0_i32_220 = arith.constant 0 : i32
    %261 = arith.addi %1, %c0_i32_220 : i32
    %c0_221 = arith.constant 0 : index
    %262 = arith.index_cast %261 : i32 to index
    %c1_222 = arith.constant 1 : index
    %c0_223 = arith.constant 0 : index
    %263 = vector.load %arg5[%c0_221, %262, %c1_222, %c0_223] : memref<1x9x9x3xbf16, #tpu.memory_space<vmem>>, vector<1x4x8x3xbf16>
    %264 = vector.shape_cast %263 : vector<1x4x8x3xbf16> to vector<4x8x3xbf16>
    %265 = vector.shape_cast %264 : vector<4x8x3xbf16> to vector<32x3xbf16>
    %c2_224 = arith.constant 2 : index
    %c0_225 = arith.constant 0 : index
    %c0_226 = arith.constant 0 : index
    %266 = vector.load %arg6[%c2_224, %c0_225, %c0_226] : memref<9x3x128xbf16, #tpu.memory_space<vmem>>, vector<1x3x128xbf16>
    %267 = vector.shape_cast %266 : vector<1x3x128xbf16> to vector<3x128xbf16>
    %cst_227 = arith.constant dense<0.000000e+00> : vector<32x128xf32>
    %268 = tpu.matmul %265, %267, %cst_227 {dimension_numbers = #tpu.dot_dimension_numbers<[1], [0], [0], [1], [0, 0, 1, 1], [], []>} : vector<32x3xbf16>, vector<3x128xbf16>, vector<32x128xf32> -> vector<32x128xf32>
    %269 = arith.addf %260, %268 : vector<32x128xf32>
    %c1_i32_228 = arith.constant 1 : i32
    %270 = arith.addi %1, %c1_i32_228 : i32
    %c0_229 = arith.constant 0 : index
    %271 = arith.index_cast %270 : i32 to index
    %c0_230 = arith.constant 0 : index
    %c0_231 = arith.constant 0 : index
    %272 = vector.load %arg3[%c0_229, %271, %c0_230, %c0_231] : memref<1x9x9x3xbf16, #tpu.memory_space<vmem>>, vector<1x4x8x3xbf16>
    %273 = vector.shape_cast %272 : vector<1x4x8x3xbf16> to vector<4x8x3xbf16>
    %274 = vector.shape_cast %273 : vector<4x8x3xbf16> to vector<32x3xbf16>
    %c3_232 = arith.constant 3 : index
    %c0_233 = arith.constant 0 : index
    %c0_234 = arith.constant 0 : index
    %275 = vector.load %arg6[%c3_232, %c0_233, %c0_234] : memref<9x3x128xbf16, #tpu.memory_space<vmem>>, vector<1x3x128xbf16>
    %276 = vector.shape_cast %275 : vector<1x3x128xbf16> to vector<3x128xbf16>
    %cst_235 = arith.constant dense<0.000000e+00> : vector<32x128xf32>
    %277 = tpu.matmul %274, %276, %cst_235 {dimension_numbers = #tpu.dot_dimension_numbers<[1], [0], [0], [1], [0, 0, 1, 1], [], []>} : vector<32x3xbf16>, vector<3x128xbf16>, vector<32x128xf32> -> vector<32x128xf32>
    %278 = arith.addf %269, %277 : vector<32x128xf32>
    %c1_i32_236 = arith.constant 1 : i32
    %279 = arith.addi %1, %c1_i32_236 : i32
    %c0_237 = arith.constant 0 : index
    %280 = arith.index_cast %279 : i32 to index
    %c1_238 = arith.constant 1 : index
    %c0_239 = arith.constant 0 : index
    %281 = vector.load %arg2[%c0_237, %280, %c1_238, %c0_239] : memref<1x9x9x3xbf16, #tpu.memory_space<vmem>>, vector<1x4x8x3xbf16>
    %282 = vector.shape_cast %281 : vector<1x4x8x3xbf16> to vector<4x8x3xbf16>
    %283 = vector.shape_cast %282 : vector<4x8x3xbf16> to vector<32x3xbf16>
    %c4_240 = arith.constant 4 : index
    %c0_241 = arith.constant 0 : index
    %c0_242 = arith.constant 0 : index
    %284 = vector.load %arg6[%c4_240, %c0_241, %c0_242] : memref<9x3x128xbf16, #tpu.memory_space<vmem>>, vector<1x3x128xbf16>
    %285 = vector.shape_cast %284 : vector<1x3x128xbf16> to vector<3x128xbf16>
    %cst_243 = arith.constant dense<0.000000e+00> : vector<32x128xf32>
    %286 = tpu.matmul %283, %285, %cst_243 {dimension_numbers = #tpu.dot_dimension_numbers<[1], [0], [0], [1], [0, 0, 1, 1], [], []>} : vector<32x3xbf16>, vector<3x128xbf16>, vector<32x128xf32> -> vector<32x128xf32>
    %287 = arith.addf %278, %286 : vector<32x128xf32>
    %c1_i32_244 = arith.constant 1 : i32
    %288 = arith.addi %1, %c1_i32_244 : i32
    %c0_245 = arith.constant 0 : index
    %289 = arith.index_cast %288 : i32 to index
    %c1_246 = arith.constant 1 : index
    %c0_247 = arith.constant 0 : index
    %290 = vector.load %arg3[%c0_245, %289, %c1_246, %c0_247] : memref<1x9x9x3xbf16, #tpu.memory_space<vmem>>, vector<1x4x8x3xbf16>
    %291 = vector.shape_cast %290 : vector<1x4x8x3xbf16> to vector<4x8x3xbf16>
    %292 = vector.shape_cast %291 : vector<4x8x3xbf16> to vector<32x3xbf16>
    %c5_248 = arith.constant 5 : index
    %c0_249 = arith.constant 0 : index
    %c0_250 = arith.constant 0 : index
    %293 = vector.load %arg6[%c5_248, %c0_249, %c0_250] : memref<9x3x128xbf16, #tpu.memory_space<vmem>>, vector<1x3x128xbf16>
    %294 = vector.shape_cast %293 : vector<1x3x128xbf16> to vector<3x128xbf16>
    %cst_251 = arith.constant dense<0.000000e+00> : vector<32x128xf32>
    %295 = tpu.matmul %292, %294, %cst_251 {dimension_numbers = #tpu.dot_dimension_numbers<[1], [0], [0], [1], [0, 0, 1, 1], [], []>} : vector<32x3xbf16>, vector<3x128xbf16>, vector<32x128xf32> -> vector<32x128xf32>
    %296 = arith.addf %287, %295 : vector<32x128xf32>
    %c1_i32_252 = arith.constant 1 : i32
    %297 = arith.addi %1, %c1_i32_252 : i32
    %c0_253 = arith.constant 0 : index
    %298 = arith.index_cast %297 : i32 to index
    %c0_254 = arith.constant 0 : index
    %c0_255 = arith.constant 0 : index
    %299 = vector.load %arg5[%c0_253, %298, %c0_254, %c0_255] : memref<1x9x9x3xbf16, #tpu.memory_space<vmem>>, vector<1x4x8x3xbf16>
    %300 = vector.shape_cast %299 : vector<1x4x8x3xbf16> to vector<4x8x3xbf16>
    %301 = vector.shape_cast %300 : vector<4x8x3xbf16> to vector<32x3xbf16>
    %c6_256 = arith.constant 6 : index
    %c0_257 = arith.constant 0 : index
    %c0_258 = arith.constant 0 : index
    %302 = vector.load %arg6[%c6_256, %c0_257, %c0_258] : memref<9x3x128xbf16, #tpu.memory_space<vmem>>, vector<1x3x128xbf16>
    %303 = vector.shape_cast %302 : vector<1x3x128xbf16> to vector<3x128xbf16>
    %cst_259 = arith.constant dense<0.000000e+00> : vector<32x128xf32>
    %304 = tpu.matmul %301, %303, %cst_259 {dimension_numbers = #tpu.dot_dimension_numbers<[1], [0], [0], [1], [0, 0, 1, 1], [], []>} : vector<32x3xbf16>, vector<3x128xbf16>, vector<32x128xf32> -> vector<32x128xf32>
    %305 = arith.addf %296, %304 : vector<32x128xf32>
    %c1_i32_260 = arith.constant 1 : i32
    %306 = arith.addi %1, %c1_i32_260 : i32
    %c0_261 = arith.constant 0 : index
    %307 = arith.index_cast %306 : i32 to index
    %c1_262 = arith.constant 1 : index
    %c0_263 = arith.constant 0 : index
    %308 = vector.load %arg4[%c0_261, %307, %c1_262, %c0_263] : memref<1x9x9x3xbf16, #tpu.memory_space<vmem>>, vector<1x4x8x3xbf16>
    %309 = vector.shape_cast %308 : vector<1x4x8x3xbf16> to vector<4x8x3xbf16>
    %310 = vector.shape_cast %309 : vector<4x8x3xbf16> to vector<32x3xbf16>
    %c7_264 = arith.constant 7 : index
    %c0_265 = arith.constant 0 : index
    %c0_266 = arith.constant 0 : index
    %311 = vector.load %arg6[%c7_264, %c0_265, %c0_266] : memref<9x3x128xbf16, #tpu.memory_space<vmem>>, vector<1x3x128xbf16>
    %312 = vector.shape_cast %311 : vector<1x3x128xbf16> to vector<3x128xbf16>
    %cst_267 = arith.constant dense<0.000000e+00> : vector<32x128xf32>
    %313 = tpu.matmul %310, %312, %cst_267 {dimension_numbers = #tpu.dot_dimension_numbers<[1], [0], [0], [1], [0, 0, 1, 1], [], []>} : vector<32x3xbf16>, vector<3x128xbf16>, vector<32x128xf32> -> vector<32x128xf32>
    %314 = arith.addf %305, %313 : vector<32x128xf32>
    %c1_i32_268 = arith.constant 1 : i32
    %315 = arith.addi %1, %c1_i32_268 : i32
    %c0_269 = arith.constant 0 : index
    %316 = arith.index_cast %315 : i32 to index
    %c1_270 = arith.constant 1 : index
    %c0_271 = arith.constant 0 : index
    %317 = vector.load %arg5[%c0_269, %316, %c1_270, %c0_271] : memref<1x9x9x3xbf16, #tpu.memory_space<vmem>>, vector<1x4x8x3xbf16>
    %318 = vector.shape_cast %317 : vector<1x4x8x3xbf16> to vector<4x8x3xbf16>
    %319 = vector.shape_cast %318 : vector<4x8x3xbf16> to vector<32x3xbf16>
    %c8_272 = arith.constant 8 : index
    %c0_273 = arith.constant 0 : index
    %c0_274 = arith.constant 0 : index
    %320 = vector.load %arg6[%c8_272, %c0_273, %c0_274] : memref<9x3x128xbf16, #tpu.memory_space<vmem>>, vector<1x3x128xbf16>
    %321 = vector.shape_cast %320 : vector<1x3x128xbf16> to vector<3x128xbf16>
    %cst_275 = arith.constant dense<0.000000e+00> : vector<32x128xf32>
    %322 = tpu.matmul %319, %321, %cst_275 {dimension_numbers = #tpu.dot_dimension_numbers<[1], [0], [0], [1], [0, 0, 1, 1], [], []>} : vector<32x3xbf16>, vector<3x128xbf16>, vector<32x128xf32> -> vector<32x128xf32>
    %323 = arith.addf %314, %322 : vector<32x128xf32>
    %324 = arith.maximumf %243, %323 : vector<32x128xf32>
    %c0_276 = arith.constant 0 : index
    %c0_277 = arith.constant 0 : index
    %325 = vector.load %arg7[%c0_276, %c0_277] : memref<1x128xf32, #tpu.memory_space<vmem>>, vector<1x128xf32>
    %326 = vector.broadcast %325 : vector<1x128xf32> to vector<32x128xf32>
    %327 = arith.addf %324, %326 : vector<32x128xf32>
    %cst_278 = arith.constant 0.000000e+00 : f32
    %328 = vector.broadcast %cst_278 : f32 to vector<32x128xf32>
    %329 = arith.maximumf %327, %328 : vector<32x128xf32>
    %330 = vector.shape_cast %329 : vector<32x128xf32> to vector<4x8x128xf32>
    %331 = arith.truncf %330 : vector<4x8x128xf32> to vector<4x8x128xbf16>
    %c0_279 = arith.constant 0 : index
    %c0_280 = arith.constant 0 : index
    %c0_281 = arith.constant 0 : index
    %c0_282 = arith.constant 0 : index
    %332 = vector.load %arg8[%c0_279, %c0_280, %c0_281, %c0_282] : memref<1x4x8x128xbf16, #tpu.memory_space<vmem>>, vector<1x4x8x128xbf16>
    %333 = vector.shape_cast %332 : vector<1x4x8x128xbf16> to vector<4x8x128xbf16>
    %334 = vector.shape_cast %331 : vector<4x8x128xbf16> to vector<1x4x8x128xbf16>
    tpu.vector_store %arg8[%c0_279, %c0_280, %c0_281, %c0_282], %334 {strides = array<i32>} : memref<1x4x8x128xbf16, #tpu.memory_space<vmem>>, vector<1x4x8x128xbf16>,
    return
  }
  func.func @transform_0(%arg0: i32, %arg1: i32) -> (i32, i32, i32, i32) {
    %c0_i32 = arith.constant 0 : i32
    %c0_i32_0 = arith.constant 0 : i32
    %c0_i32_1 = arith.constant 0 : i32
    %c0_i32_2 = arith.constant 0 : i32
    return %arg0, %c0_i32, %c0_i32_0, %c0_i32_1 : i32, i32, i32, i32
  }
  func.func @transform_1(%arg0: i32, %arg1: i32) -> (i32, i32, i32, i32) {
    %c0_i32 = arith.constant 0 : i32
    %c0_i32_0 = arith.constant 0 : i32
    %c0_i32_1 = arith.constant 0 : i32
    %c0_i32_2 = arith.constant 0 : i32
    return %arg0, %c0_i32, %c0_i32_0, %c0_i32_1 : i32, i32, i32, i32
  }
  func.func @transform_2(%arg0: i32, %arg1: i32) -> (i32, i32, i32, i32) {
    %c0_i32 = arith.constant 0 : i32
    %c0_i32_0 = arith.constant 0 : i32
    %c0_i32_1 = arith.constant 0 : i32
    %c0_i32_2 = arith.constant 0 : i32
    return %arg0, %c0_i32, %c0_i32_0, %c0_i32_1 : i32, i32, i32, i32
  }
  func.func @transform_3(%arg0: i32, %arg1: i32) -> (i32, i32, i32, i32) {
    %c0_i32 = arith.constant 0 : i32
    %c0_i32_0 = arith.constant 0 : i32
    %c0_i32_1 = arith.constant 0 : i32
    %c0_i32_2 = arith.constant 0 : i32
    return %arg0, %c0_i32, %c0_i32_0, %c0_i32_1 : i32, i32, i32, i32
  }
  func.func @transform_4(%arg0: i32, %arg1: i32) -> (i32, i32, i32) {
    %c0_i32 = arith.constant 0 : i32
    %c0_i32_0 = arith.constant 0 : i32
    %c0_i32_1 = arith.constant 0 : i32
    %c0_i32_2 = arith.constant 0 : i32
    return %c0_i32, %c0_i32_0, %c0_i32_1 : i32, i32, i32
  }
  func.func @transform_5(%arg0: i32, %arg1: i32) -> (i32, i32) {
    %c0_i32 = arith.constant 0 : i32
    %c0_i32_0 = arith.constant 0 : i32
    %c0_i32_1 = arith.constant 0 : i32
    return %c0_i32, %c0_i32_0 : i32, i32
  }
  func.func @transform_6(%arg0: i32, %arg1: i32) -> (i32, i32, i32, i32) {
    %c0_i32 = arith.constant 0 : i32
    %c0_i32_0 = arith.constant 0 : i32
    %c0_i32_1 = arith.constant 0 : i32
    return %arg0, %arg1, %c0_i32, %c0_i32_0 : i32, i32, i32, i32
  }
}

</mosaic_0001>

<bundles_post_ra>
// kernel: legacy_model_forward.1
= control target key start
LH: loop header
LB: loop body
LE: loop exit
PB: predicated region body
PF: predicated region fallthrough
CT: control target
= control target key end

     0   :  { %s2523_s21 = smov 0   ;;  %s2525_s22 = smov 0   ;;  %s3102_s0 = inlined_call_operand.vmem [shape: bf16[2,9,9,3], index: 0, kind: input, shape index: {}]   ;;  %s3103_s1 = inlined_call_operand.vmem [shape: bf16[2,9,9,3], index: 1, kind: input, shape index: {}]   ;;  %s3104_s2 = inlined_call_operand.vmem [shape: bf16[2,9,9,3], index: 2, kind: input, shape index: {}]   ;;  %s3105_s3 = inlined_call_operand.vmem [shape: bf16[2,9,9,3], index: 3, kind: input, shape index: {}]   ;;  %s3106_s4 = inlined_call_operand.vmem [shape: bf16[9,3,128], index: 4, kind: input, shape index: {}]   ;;  %s3107_s5 = inlined_call_operand.vmem [shape: f32[1,128], index: 5, kind: input, shape index: {}]   ;;  %s3108_s6 = inlined_call_operand.vmem [shape: bf16[2,8,8,128], index: 6, kind: output, shape index: {}]  }
   0x1   :  { %s2527_s23 = smov 0   ;;  %s2529_s24 = smov 0  }
   0x2   :  { %s2531_s25 = smov 0  }
   0x3 LB: > { %s25_s26 = sadd.s32 1, %s2477_s23  ;;  %s28_s27 = sadd.s32 1, %s2481_s24  ;;  %s2485_s25 = sphi %s2531_s25, %s16_s25   ;;  %s2481_s24 = sphi %s2529_s24, %s3114_s24   ;;  %s2477_s23 = sphi %s2527_s23, %s3113_s23   ;;  %s2473_s22 = sphi %s2525_s22, %s3112_s22   ;;  %s2469_s21 = sphi %s2523_s21, %s3111_s21  }
   0x4   : > { %p26_p0 = scmp.ge.s32.totalorder %s25_s26, 2  ;;  %p2152_p1 = scmp.ge.s32.totalorder %s2485_s25, 1 }
   0x5   : > { %p256_p2 = scmp.lt.s32.totalorder %s2485_s25, 5 }
   0x6   : > { %s3116_s26 = smov (%p26_p0, %s25_s26), 0  ;;  %s3118_s27 = smov (!%p26_p0, %s28_s27), %s2481_s24 }
   0x7   : > { %p257_p3 = pnand %p2152_p1, %p256_p2  ;;  %p30_p4 = scmp.ge.s32.totalorder %s3118_s27, 2 }
   0x8   : > { %p305_p5 = scmp.lt.s32.totalorder (!%p257_p3), %s2473_s22, 1  ;;  %s2596_s19 = sshll.u32 (!%p257_p3), %s2469_s21, 5 }
   0x9   : > { %s3120_s27 = smov (%p30_p4, %s3118_s27), 0  ;;  %260 = sbr.rel (%p257_p3) target bundleno = 461 (0x1cd), region = 44 }
   0xe   : > { %v2164_v0 = vld [vmem:[%s3106_s4 + $0x2] sm:$0x3]  ;;  %vm370_vm0 = vcmask 1040384   ;;  %vm371_vm1 = vcmask 1041408   ;;  %v2487_v1 = vmov 65535   ;;  %s3122_s22 = smov (!%p305_p5, %s2473_s22), 1 }
   0xf   : > { %v372_v2 = vsel %vm370_vm0, 4294967295, %v2487_v1  ;;  %v344_v3 = vld [vmem:[%s3106_s4] sm:$0x3]  ;;  %v2189_v5 = vld [vmem:[%s3106_s4 + $0x6] sm:$0x3]  ;;  %s2593_s18 = smul.u32 72, %s3122_s22 }
  0x10   : > { %v2561_v4 = vsel %vm371_vm1, %v372_v2, 0  ;;  %v2185_v6 = vld [vmem:[%s3106_s4 + $0x4] sm:$0x3]  ;;  %v2221_v11 = vld [vmem:[%s3106_s4 + $0xc] sm:$0x3]  ;;  %vm363_vm2 = vcmask 23552  }
  0x11   : > { %v2572_v7 = vand.u32 %v2164_v0, %v2561_v4  ;;  %v2575_v8 = vand.u32 %v2561_v4, %v344_v3  ;;  %v2578_v9 = vand.u32 %v2189_v5, %v2561_v4  ;;  %v2581_v10 = vand.u32 %v2185_v6, %v2561_v4  ;;  %v2201_v12 = vld [vmem:[%s3106_s4 + $0x8] sm:$0x3]  ;;  %v2238_v13 = vld [vmem:[%s3106_s4 + $0xe] sm:$0x3]  ;;  %v2212_v17 = vld [vmem:[%s3106_s4 + $0xa] sm:$0x3]  ;;  %s314_s7 = scalar_lea.vmem %s3103_s1, %s2593_s18  ;;  %s309_s10 = scalar_lea.vmem %s3102_s0, %s2593_s18 }
  0x12   : > { %v2599_v14 = vand.u32 %v2221_v11, %v2561_v4  ;;  %v2602_v15 = vand.u32 %v2201_v12, %v2561_v4  ;;  %v2607_v16 = vand.u32 %v2238_v13, %v2561_v4  ;;  %v2623_v18 = vand.u32 %v2212_v17, %v2561_v4  ;;  %s2626_s11 = scalar_lea.vmem %s314_s7, %s2596_s19  ;;  %s2629_s12 = scalar_lea.vmem %s309_s10, %s2596_s19 }
  0x13   : > { %384 = vmatpush.bf16.msra.mxu0 %v2572_v7  ;;  %422 = vmatpush.bf16.msra.mxu1 %v2575_v8  ;;  %v2167_v19 = vld [vmem:[%s2626_s11] sm:$0xf]  ;;  %v2373_v20 = vld [vmem:[%s2626_s11 + $0x4] sm:$0xf0]  ;;  %s319_s15 = scalar_lea.vmem %s3104_s2, %s2593_s18  ;;  %v435_v25 = vld [vmem:[%s2629_s12 + $0x4] sm:$0x1]  ;;  %s324_s30 = scalar_lea.vmem %s3105_s3, %s2593_s18 }
  0x14   : > { %575 = vmatpush.bf16.msra.mxu3 %v2578_v9  ;;  %525 = vmatpush.bf16.msra.mxu2 %v2581_v10  ;;  %v2177_v21 = vld [vmem:[%s2629_s12] sm:$0xf]  ;;  %v2642_v22 = vor.u32 %v2373_v20, %v2167_v19  ;;  %v2370_v23 = vld [vmem:[%s2629_s12 + $0x4] sm:$0xf0]  ;;  %s2646_s16 = scalar_lea.vmem %s319_s15, %s2596_s19  ;;  %v437_v31 = vld [vmem:[%s2629_s12 + $0xc] sm:$0x1]  ;;  %s2717_s7 = scalar_lea.vmem %s324_s30, %s2596_s19 }
  0x15   : > { %v434_v24 = vld [vmem:[%s2629_s12] sm:$0xf]  ;;  %v2178_v26 = vor.u32 %v2370_v23, %v2177_v21  ;;  %v2376_v28 = vld [vmem:[%s2646_s16 + $0x4] sm:$0xf0]  ;;  %v455_v34 = vshll.u32 %v435_v25, 16  ;;  %v469_v37 = vshll.u32 %v437_v31, 16 }
  0x16   : > { %v2192_v27 = vld [vmem:[%s2646_s16] sm:$0xf]  ;;  %v436_v29 = vld [vmem:[%s2629_s12 + $0x8] sm:$0xf]  ;;  %2173 = vmatmul.msk.bf16.vlgmr.msra.gmra.mxu0 %vm363_vm2, %v2642_v22  ;;  %v446_v32 = vshrl.u32 %v434_v24, 16  ;;  %v449_v33 = vshll.u32 %v434_v24, 16 }
  0x17   : > { %625 = vmatpush.bf16.msrb.mxu0 %v2602_v15  ;;  %729 = vmatpush.bf16.msrb.mxu1 %v2623_v18  ;;  %v2655_v30 = vor.u32 %v2376_v28, %v2192_v27  ;;  %v460_v35 = vshrl.u32 %v436_v29, 16  ;;  %v463_v36 = vshll.u32 %v436_v29, 16  ;;  %vm442_vm3 = vsmask.f32 3328  ;;  %v2171_v47 = vld [vmem:[%s2626_s11 + $0x10] sm:$0xf] }
  0x18   : > { %781 = vmatpush.bf16.msrb.mxu2 %v2599_v14  ;;  %831 = vmatpush.bf16.msrb.mxu3 %v2607_v16  ;;  %vm443_vm4 = vsmask.f32 7440  ;;  %v448_v38 = vrot.slane %v446_v32, 4  ;;  %v451_v39 = vrot.slane %v449_v33, 5  ;;  %v457_v43 = vrot.slane %v455_v34, 5  ;;  %s2157_s18 = sshll.u32 %s2469_s21, 2 }
  0x19   : > { %2183 = vmatmul.msk.bf16.vlgmr.msra.gmra.mxu1 %vm363_vm2, %v2178_v26  ;;  %2198 = vmatmul.msk.bf16.vlgmr.msra.gmra.mxu3 %vm363_vm2, %v2655_v30  ;;  %v462_v40 = vrot.slane %v460_v35, 4  ;;  %v465_v41 = vrot.slane %v463_v36, 5  ;;  %vm2663_vm5 = vmor %vm442_vm3, %vm443_vm4  ;;  %v471_v46 = vrot.slane %v469_v37, 5  ;;  %v2374_v48 = vld [vmem:[%s2626_s11 + $0x14] sm:$0xf0]  ;;  %p328_p6 = scmp.lt.s32.totalorder %s2157_s18, 7 }
  0x1a   : > { %v452_v42 = vor.u32 %v451_v39, %v448_v38  ;;  %v438_v49 = vld [vmem:[%s2629_s12 + $0x10] sm:$0xf]  ;;  %v440_v50 = vld [vmem:[%s2629_s12 + $0x18] sm:$0xf]  ;;  %v439_v52 = vld [vmem:[%s2629_s12 + $0x14] sm:$0x1]  ;;  %v2682_v13 = vor.u32 %v2374_v48, %v2171_v47 }
  0x1b   : > { %958 = vmatpush.bf16.msra.mxu1 %v2572_v7  ;;  %v466_v45 = vor.u32 %v465_v41, %v462_v40  ;;  %v474_v53 = vshrl.u32 %v438_v49, 16  ;;  %v477_v54 = vshll.u32 %v438_v49, 16  ;;  %v2181_v56 = vld [vmem:[%s2629_s12 + $0x10] sm:$0xf]  ;;  %v441_v57 = vld [vmem:[%s2629_s12 + $0x1c] sm:$0x1] }
  0x1c   : > { %1072 = vmatpush.bf16.msra.mxu3 %v2581_v10  ;;  %v453_v51 = vrot.slane %v452_v42, 4  ;;  %v488_v58 = vshrl.u32 %v440_v50, 16  ;;  %v491_v59 = vshll.u32 %v440_v50, 16  ;;  %v2371_v61 = vld [vmem:[%s2629_s12 + $0x14] sm:$0xf0]  ;;  %v483_v17 = vshll.u32 %v439_v52, 16 }
  0x1d   : > { %v467_v55 = vrot.slane %v466_v45, 4  ;;  %v2196_v62 = vld [vmem:[%s2646_s16 + $0x10] sm:$0xf]  ;;  %v476_v63 = vrot.slane %v474_v53, 4  ;;  %v479_v0 = vrot.slane %v477_v54, 5  ;;  %v497_v19 = vshll.u32 %v441_v57, 16 }
  0x1e   : > { %v458_v60 = vsel %vm2663_vm5, %v453_v51, %v457_v43  ;;  %v2377_v3 = vld [vmem:[%s2646_s16 + $0x14] sm:$0xf0]  ;;  %v490_v5 = vrot.slane %v488_v58, 4  ;;  %v493_v6 = vrot.slane %v491_v59, 5  ;;  %v641_v11 = vld [vmem:[%s2646_s16] sm:$0xf]  ;;  %v2182_v29 = vor.u32 %v2371_v61, %v2181_v56 }
  0x1f   : > { %v472_v1 = vsel %vm2663_vm5, %v467_v55, %v471_v46  ;;  %v503_v2 = vunpack.c.l.b16 %v458_v60  ;;  %v642_v20 = vld [vmem:[%s2646_s16 + $0x4] sm:$0x1]  ;;  %v643_v21 = vld [vmem:[%s2646_s16 + $0x8] sm:$0xf]  ;;  %v480_v23 = vor.u32 %v479_v0, %v476_v63  ;;  %v644_v25 = vld [vmem:[%s2646_s16 + $0xc] sm:$0x1]  ;;  %v2689_v33 = vor.u32 %v2377_v3, %v2196_v62 }
  0x20   : > { %v504_v12 = vunpack.c.l.b16 %v472_v1  ;;  %v494_v24 = vor.u32 %v493_v6, %v490_v5  ;;  %v650_v26 = vshrl.u32 %v641_v11, 16  ;;  %v653_v27 = vshll.u32 %v641_v11, 16  ;;  %v2257_v46 = vld [vmem:[%s3106_s4 + $0x10] sm:$0x3]  ;;  %v647_v54 = vld [vmem:[%s2646_s16 + $0x18] sm:$0xf] }
  0x21   : > { %v664_v31 = vshrl.u32 %v643_v21, 16  ;;  %v667_v32 = vshll.u32 %v643_v21, 16  ;;  %v659_v36 = vshll.u32 %v642_v20, 16  ;;  %v485_v37 = vrot.slane %v483_v17, 5  ;;  %v645_v51 = vld [vmem:[%s2646_s16 + $0x10] sm:$0xf] }
  0x22   : > { %v2687_v28 = vpack.c.b16 %v504_v12, %v503_v2  ;;  %v652_v34 = vrot.slane %v650_v26, 4  ;;  %v655_v35 = vrot.slane %v653_v27, 5  ;;  %v673_v40 = vshll.u32 %v644_v25, 16  ;;  %v2204_v0 = vld [vmem:[%s2717_s7] sm:$0xf]  ;;  %s3124_s18 = smov (!%p328_p6, %s2157_s18), 7 }
  0x23   : > { %v666_v38 = vrot.slane %v664_v31, 4  ;;  %v669_v39 = vrot.slane %v667_v32, 5  ;;  %v481_v41 = vrot.slane %v480_v23, 4  ;;  %v495_v42 = vrot.slane %v494_v24, 4  ;;  %v2379_v1 = vld [vmem:[%s2717_s7 + $0x4] sm:$0xf0] }
  0x24   : > { %2186 = vmatmul.msk.bf16.vlgmr.msra.gmra.mxu2 %vm363_vm2, %v2687_v28  ;;  %v499_v43 = vrot.slane %v497_v19, 5  ;;  %v656_v45 = vor.u32 %v655_v35, %v652_v34  ;;  %v661_v49 = vrot.slane %v659_v36, 5  ;;  %v2701_v50 = vand.u32 %v2257_v46, %v2561_v4  ;;  %v646_v6 = vld [vmem:[%s2646_s16 + $0x14] sm:$0x1]  ;;  %v648_v20 = vld [vmem:[%s2646_s16 + $0x1c] sm:$0x1] }
  0x25   : > { %977 = vmatpush.bf16.msra.mxu2 %v2575_v8  ;;  %v670_v47 = vor.u32 %v669_v39, %v666_v38  ;;  %v675_v53 = vrot.slane %v673_v40, 5  ;;  %v486_v55 = vsel %vm2663_vm5, %v481_v41, %v485_v37  ;;  %v678_v4 = vshrl.u32 %v645_v51, 16  ;;  %v2241_v21 = vld [vmem:[%s2626_s11 + $0x8] sm:$0xf]  ;;  %v2385_v23 = vld [vmem:[%s2626_s11 + $0xc] sm:$0xf0] }
  0x26   : > { %2174 = vmatmul.msk.bf16.gmra.mxu0 %vm363_vm2, %v2682_v13  ;;  %v657_v48 = vrot.slane %v656_v45, 4  ;;  %v500_v56 = vsel %vm2663_vm5, %v495_v42, %v499_v43  ;;  %v681_v58 = vshll.u32 %v645_v51, 16  ;;  %v692_v59 = vshrl.u32 %v647_v54, 16  ;;  %v2249_v34 = vld [vmem:[%s2629_s12 + $0x8] sm:$0xf]  ;;  %s2158_s9 = sshll.u32 %s3122_s22, 3 }
  0x27   : > { %v671_v52 = vrot.slane %v670_v47, 4  ;;  %935 = vmatpush.bf16.msra.mxu0 %v2701_v50  ;;  %v695_v60 = vshll.u32 %v647_v54, 16  ;;  %v505_v61 = vunpack.c.l.b16 %v486_v55  ;;  %v506_v62 = vunpack.c.l.b16 %v500_v56  ;;  %v2251_v39 = vld [vmem:[%s2629_s12 + $0x10] sm:$0xf]  ;;  %v989_v40 = vld [vmem:[%s2626_s11] sm:$0xf]  ;;  %s331_s21 = sadd.s32 %s2158_s9, %s3124_s18 }
  0x28   : > { %v662_v57 = vsel %vm2663_vm5, %v657_v48, %v661_v49  ;;  %v680_v3 = vrot.slane %v678_v4, 4  ;;  %v683_v11 = vrot.slane %v681_v58, 5  ;;  %v694_v12 = vrot.slane %v692_v59, 4  ;;  %v991_v41 = vld [vmem:[%s2626_s11 + $0x8] sm:$0xf]  ;;  %s2159_s10 = sshll.u32 %s331_s21, 2 }
  0x29   : > { %2184 = vmatmul.msk.bf16.gmra.mxu1 %vm363_vm2, %v2182_v29  ;;  %2199 = vmatmul.msk.bf16.gmra.mxu3 %vm363_vm2, %v2689_v33  ;;  %v676_v63 = vsel %vm2663_vm5, %v671_v52, %v675_v53  ;;  %v707_v2 = vunpack.c.l.b16 %v662_v57  ;;  %v697_v17 = vrot.slane %v695_v60, 5  ;;  %v2726_v19 = vpack.c.b16 %v506_v62, %v505_v61  ;;  %v2224_v47 = vld [vmem:[%s2629_s12 + $0x8] sm:$0xf]  ;;  %v2382_v51 = vld [vmem:[%s2629_s12 + $0xc] sm:$0xf0] }
  0x2a   : > { %v708_v5 = vunpack.c.l.b16 %v676_v63  ;;  %v2731_v24 = vor.u32 %v2379_v1, %v2204_v0  ;;  %v687_v25 = vshll.u32 %v646_v6, 16  ;;  %v684_v27 = vor.u32 %v683_v11, %v680_v3  ;;  %v2208_v56 = vld [vmem:[%s2717_s7 + $0x10] sm:$0xf]  ;;  %v2380_v4 = vld [vmem:[%s2717_s7 + $0x14] sm:$0xf0] }
  0x2b   : > { %v698_v29 = vor.u32 %v697_v17, %v694_v12  ;;  %v701_v31 = vshll.u32 %v648_v20, 16  ;;  %v2737_v32 = vor.u32 %v2385_v23, %v2241_v21  ;;  %v856_v42 = vshrl.u32 %v2249_v34, 16  ;;  %v2250_v0 = vld [vmem:[%s2629_s12 + $0xc] sm:$0x1]  ;;  %v2252_v1 = vld [vmem:[%s2629_s12 + $0x14] sm:$0x1] }
  0x2c   : > { %v2733_v26 = vpack.c.b16 %v708_v5, %v707_v2  ;;  %v685_v35 = vrot.slane %v684_v27, 4  ;;  %v689_v36 = vrot.slane %v687_v25, 5  ;;  %v859_v43 = vshll.u32 %v2249_v34, 16  ;;  %v990_v2 = vld [vmem:[%s2626_s11 + $0x4] sm:$0x1] }
  0x2d   : > { %v699_v37 = vrot.slane %v698_v29, 4  ;;  %v703_v38 = vrot.slane %v701_v31, 5  ;;  %v870_v45 = vshrl.u32 %v2251_v39, 16  ;;  %v873_v46 = vshll.u32 %v2251_v39, 16  ;;  %v992_v3 = vld [vmem:[%s2626_s11 + $0xc] sm:$0x1] }
  0x2e   : > { %v690_v48 = vsel %vm2663_vm5, %v685_v35, %v689_v36  ;;  %v998_v52 = vshrl.u32 %v989_v40, 16  ;;  %v1001_v53 = vshll.u32 %v989_v40, 16  ;;  %v1012_v54 = vshrl.u32 %v991_v41, 16  ;;  %v2245_v20 = vld [vmem:[%s2626_s11 + $0x18] sm:$0xf] }
  0x2f   : > { %v704_v49 = vsel %vm2663_vm5, %v699_v37, %v703_v38  ;;  %v1015_v55 = vshll.u32 %v991_v41, 16  ;;  %v858_v57 = vrot.slane %v856_v42, 4  ;;  %v861_v58 = vrot.slane %v859_v43, 5  ;;  %v2386_v21 = vld [vmem:[%s2626_s11 + $0x1c] sm:$0xf0] }
  0x30   : > { %v872_v59 = vrot.slane %v870_v45, 4  ;;  %v875_v60 = vrot.slane %v873_v46, 5  ;;  %v2760_v61 = vor.u32 %v2382_v51, %v2224_v47  ;;  %v709_v62 = vunpack.c.l.b16 %v690_v48  ;;  %v2253_v48 = vld [vmem:[%s2629_s12 + $0x18] sm:$0xf] }
  0x31   : > { %v710_v63 = vunpack.c.l.b16 %v704_v49  ;;  %v1000_v5 = vrot.slane %v998_v52, 4  ;;  %v1003_v6 = vrot.slane %v1001_v53, 5  ;;  %v1014_v11 = vrot.slane %v1012_v54, 4  ;;  %v2255_v49 = vld [vmem:[%s2629_s12 + $0x20] sm:$0xf] }
  0x32   : > { %v1017_v12 = vrot.slane %v1015_v55, 5  ;;  %v2766_v17 = vor.u32 %v2380_v4, %v2208_v56  ;;  %v862_v23 = vor.u32 %v861_v58, %v858_v57  ;;  %v865_v25 = vshll.u32 %v2250_v0, 16  ;;  %v993_v53 = vld [vmem:[%s2626_s11 + $0x10] sm:$0xf]  ;;  %v995_v54 = vld [vmem:[%s2626_s11 + $0x18] sm:$0xf] }
  0x33   : > { %v876_v27 = vor.u32 %v875_v60, %v872_v59  ;;  %v879_v29 = vshll.u32 %v2252_v1, 16  ;;  %v2770_v31 = vpack.c.b16 %v710_v63, %v709_v62  ;;  %v1007_v34 = vshll.u32 %v990_v2, 16  ;;  %v2228_v58 = vld [vmem:[%s2629_s12 + $0x18] sm:$0xf]  ;;  %v2383_v62 = vld [vmem:[%s2629_s12 + $0x1c] sm:$0xf0] }
  0x34   : > { %2187 = vmatmul.msk.bf16.gmra.mxu2 %vm363_vm2, %v2726_v19  ;;  %v1021_v35 = vshll.u32 %v992_v3, 16  ;;  %v2774_v36 = vor.u32 %v2386_v21, %v2245_v20  ;;  %v1004_v37 = vor.u32 %v1003_v6, %v1000_v5  ;;  %v1018_v38 = vor.u32 %v1017_v12, %v1014_v11 }
  0x35   : > { %v863_v39 = vrot.slane %v862_v23, 4  ;;  %v867_v40 = vrot.slane %v865_v25, 5  ;;  %v877_v41 = vrot.slane %v876_v27, 4  ;;  %v881_v42 = vrot.slane %v879_v29, 5  ;;  %v2254_v27 = vld [vmem:[%s2629_s12 + $0x1c] sm:$0x1] }
  0x36   : > { %2210 = vmatmul.msk.bf16.vlgmr.msrb.gmra.mxu0 %vm363_vm2, %v2731_v24  ;;  %v1009_v43 = vrot.slane %v1007_v34, 5  ;;  %v1023_v45 = vrot.slane %v1021_v35, 5  ;;  %v1005_v46 = vrot.slane %v1004_v37, 4  ;;  %v1019_v47 = vrot.slane %v1018_v38, 4  ;;  %v2256_v29 = vld [vmem:[%s2629_s12 + $0x24] sm:$0x1]  ;;  %s333_s12 = scalar_lea.vmem %s3108_s6, %s2159_s10 }
  0x37   : > { %1095 = vmatpush.bf16.msrb.mxu0 %v2578_v9  ;;  %v868_v51 = vsel %vm2663_vm5, %v863_v39, %v867_v40  ;;  %v882_v52 = vsel %vm2663_vm5, %v877_v41, %v881_v42  ;;  %v884_v55 = vshrl.u32 %v2253_v48, 16  ;;  %v887_v56 = vshll.u32 %v2253_v48, 16  ;;  %v994_v40 = vld [vmem:[%s2626_s11 + $0x14] sm:$0x1]  ;;  %v996_v41 = vld [vmem:[%s2626_s11 + $0x1c] sm:$0x1] }
  0x38   : > { %v898_v4 = vshrl.u32 %v2255_v49, 16  ;;  %v901_v57 = vshll.u32 %v2255_v49, 16  ;;  %v1010_v59 = vsel %vm2663_vm5, %v1005_v46, %v1009_v43  ;;  %v1024_v60 = vsel %vm2663_vm5, %v1019_v47, %v1023_v45 }
  0x39   : > { %2213 = vmatmul.msk.bf16.vlgmr.msrb.gmra.mxu1 %vm363_vm2, %v2733_v26  ;;  %2247 = vmatmul.msk.bf16.vlgmr.msrb.gmra.mxu3 %vm363_vm2, %v2737_v32  ;;  %v1026_v63 = vshrl.u32 %v993_v53, 16  ;;  %v1029_v0 = vshll.u32 %v993_v53, 16  ;;  %v1040_v1 = vshrl.u32 %v995_v54, 16  ;;  %v1043_v2 = vshll.u32 %v995_v54, 16 }
  0x3a   : > { %1118 = vmatpush.bf16.msrb.mxu1 %v2602_v15  ;;  %1240 = vmatpush.bf16.msrb.mxu3 %v2599_v14  ;;  %v913_v3 = vunpack.c.l.b16 %v868_v51  ;;  %v914_v5 = vunpack.c.l.b16 %v882_v52  ;;  %v886_v6 = vrot.slane %v884_v55, 4  ;;  %v889_v11 = vrot.slane %v887_v56, 5 }
  0x3b   : > { %v900_v12 = vrot.slane %v898_v4, 4  ;;  %v903_v20 = vrot.slane %v901_v57, 5  ;;  %v2797_v21 = vor.u32 %v2383_v62, %v2228_v58  ;;  %v1053_v23 = vunpack.c.l.b16 %v1010_v59 }
  0x3c   : > { %v1054_v25 = vunpack.c.l.b16 %v1024_v60  ;;  %v1028_v34 = vrot.slane %v1026_v63, 4  ;;  %v1031_v35 = vrot.slane %v1029_v0, 5  ;;  %v1042_v37 = vrot.slane %v1040_v1, 4 }
  0x3d   : > { %v1045_v38 = vrot.slane %v1043_v2, 5  ;;  %v2801_v39 = vpack.c.b16 %v914_v5, %v913_v3  ;;  %v890_v42 = vor.u32 %v889_v11, %v886_v6  ;;  %v893_v43 = vshll.u32 %v2254_v27, 16  ;;  %v1134_v11 = vld [vmem:[%s2717_s7] sm:$0xf] }
  0x3e   : > { %v904_v45 = vor.u32 %v903_v20, %v900_v12  ;;  %v907_v46 = vshll.u32 %v2256_v29, 16  ;;  %v1057_v47 = vpack.c.b16 %v1054_v25, %v1053_v23  ;;  %v1032_v48 = vor.u32 %v1031_v35, %v1028_v34  ;;  %v1136_v12 = vld [vmem:[%s2717_s7 + $0x8] sm:$0xf] }
  0x3f   : > { %v1035_v49 = vshll.u32 %v994_v40, 16  ;;  %v1046_v51 = vor.u32 %v1045_v38, %v1042_v37  ;;  %v1049_v52 = vshll.u32 %v996_v41, 16  ;;  %v891_v53 = vrot.slane %v890_v42, 4  ;;  %v1135_v37 = vld [vmem:[%s2717_s7 + $0x4] sm:$0x1] }
  0x40   : > { %v895_v54 = vrot.slane %v893_v43, 5  ;;  %v905_v55 = vrot.slane %v904_v45, 4  ;;  %v909_v56 = vrot.slane %v907_v46, 5  ;;  %v1033_v4 = vrot.slane %v1032_v48, 4  ;;  %v1137_v38 = vld [vmem:[%s2717_s7 + $0xc] sm:$0x1] }
  0x41   : > { %v1037_v57 = vrot.slane %v1035_v49, 5  ;;  %v1047_v58 = vrot.slane %v1046_v51, 4  ;;  %v1051_v59 = vrot.slane %v1049_v52, 5  ;;  %v1143_v20 = vshrl.u32 %v1134_v11, 16  ;;  %v1138_v48 = vld [vmem:[%s2717_s7 + $0x10] sm:$0xf] }
  0x42   : > { %v910_v60 = vsel %vm2663_vm5, %v905_v55, %v909_v56  ;;  %v1146_v23 = vshll.u32 %v1134_v11, 16  ;;  %v1157_v25 = vshrl.u32 %v1136_v12, 16  ;;  %v1160_v27 = vshll.u32 %v1136_v12, 16  ;;  %v1140_v49 = vld [vmem:[%s2717_s7 + $0x18] sm:$0xf] }
  0x43   : > { %v1038_v62 = vsel %vm2663_vm5, %v1033_v4, %v1037_v57  ;;  %v1052_v63 = vsel %vm2663_vm5, %v1047_v58, %v1051_v59  ;;  %v916_v1 = vunpack.c.l.b16 %v910_v60  ;;  %v1152_v41 = vshll.u32 %v1135_v37, 16  ;;  %v2276_v56 = vld [vmem:[%s2626_s11 + $0x8] sm:$0xf]  ;;  %v2278_v4 = vld [vmem:[%s2626_s11 + $0x10] sm:$0xf] }
  0x44   : > { %2230 = vmatmul.msk.bf16.vlgmr.msrb.gmra.mxu2 %vm363_vm2, %v2760_v61  ;;  %v1055_v2 = vunpack.c.l.b16 %v1038_v62  ;;  %v1056_v3 = vunpack.c.l.b16 %v1052_v63  ;;  %v1148_v29 = vrot.slane %v1146_v23, 5  ;;  %v1159_v34 = vrot.slane %v1157_v25, 4  ;;  %v2279_v37 = vld [vmem:[%s2626_s11 + $0x14] sm:$0x1] }
  0x45   : > { %1217 = vmatpush.bf16.msrb.mxu2 %v2623_v18  ;;  %v1162_v35 = vrot.slane %v1160_v27, 5  ;;  %v1166_v43 = vshll.u32 %v1137_v38, 16  ;;  %v1188_v55 = vshll.u32 %v1140_v49, 16  ;;  %v1288_v59 = vshrl.u32 %v2276_v56, 16 }
  0x46   : > { %2211 = vmatmul.msk.bf16.gmra.mxu0 %vm363_vm2, %v2766_v17  ;;  %v1058_v6 = vpack.c.b16 %v1056_v3, %v1055_v2  ;;  %v1302_v60 = vshrl.u32 %v2278_v4, 16  ;;  %v1305_v62 = vshll.u32 %v2278_v4, 16  ;;  %v1139_v3 = vld [vmem:[%s2717_s7 + $0x14] sm:$0x1] }
  0x47   : > { %v1163_v42 = vor.u32 %v1162_v35, %v1159_v34  ;;  %v1190_v2 = vrot.slane %v1188_v55, 5  ;;  %v1290_v12 = vrot.slane %v1288_v59, 4  ;;  %v2277_v35 = vld [vmem:[%s2626_s11 + $0xc] sm:$0x1] }
  0x48   : > { %v1304_v23 = vrot.slane %v1302_v60, 4  ;;  %v1307_v25 = vrot.slane %v1305_v62, 5 }
  0x49   : > { %2214 = vmatmul.msk.bf16.gmra.mxu1 %vm363_vm2, %v2770_v31  ;;  %2248 = vmatmul.msk.bf16.gmra.mxu3 %vm363_vm2, %v2774_v36  ;;  %v1164_v46 = vrot.slane %v1163_v42, 4  ;;  %v1311_v42 = vshll.u32 %v2279_v37, 16 }
  0x54   : > { %2231 = vmatmul.msk.bf16.gmra.mxu2 %vm363_vm2, %v2797_v21 }
  0x56   : > { %2258 = vmatmul.msk.bf16.vlgmr.msra.gmra.mxu0 %vm363_vm2, %v2801_v39 }
  0x57   : > { %1263 = vmatpush.bf16.msra.mxu0 %v2607_v16 }
  0x59   : > { %2260 = vmatmul.msk.bf16.vlgmr.msra.gmra.mxu1 %vm363_vm2, %v2687_v28  ;;  %2264 = vmatmul.msk.bf16.vlgmr.msra.gmra.mxu3 %vm363_vm2, %v1057_v47  ;;  %v896_v28 = vsel %vm2663_vm5, %v891_v53, %v895_v54  ;;  %v1168_v47 = vrot.slane %v1166_v43, 5  ;;  %v1171_v53 = vshrl.u32 %v1138_v48, 16  ;;  %v1174_v54 = vshll.u32 %v1138_v48, 16 }
  0x5a   : > { %1362 = vmatpush.bf16.msra.mxu1 %v2701_v50  ;;  %1408 = vmatpush.bf16.msra.mxu3 %v2575_v8  ;;  %v915_v0 = vunpack.c.l.b16 %v896_v28  ;;  %v1291_v28 = vshll.u32 %v2276_v56, 16 }
  0x5b   : > { %v1169_v52 = vsel %vm2663_vm5, %v1164_v46, %v1168_v47  ;;  %v1173_v63 = vrot.slane %v1171_v53, 4 }
  0x5c   : > { %v2823_v5 = vpack.c.b16 %v916_v1, %v915_v0  ;;  %v1199_v58 = vunpack.c.l.b16 %v1169_v52  ;;  %v1176_v0 = vrot.slane %v1174_v54, 5  ;;  %v2280_v54 = vld [vmem:[%s2626_s11 + $0x18] sm:$0xf] }
  0x5d   : > { %v1319_v59 = vshll.u32 %v2280_v54, 16 }
  0x5e   : > { %v1177_v27 = vor.u32 %v1176_v0, %v1173_v63 }
  0x60   : > { %v1178_v43 = vrot.slane %v1177_v27, 4 }
  0x64   : > { %2262 = vmatmul.msk.bf16.vlgmr.msra.gmra.mxu2 %vm363_vm2, %v2642_v22  ;;  %v1145_v22 = vrot.slane %v1143_v20, 4  ;;  %v1293_v20 = vrot.slane %v1291_v28, 5 }
  0x65   : > { %1389 = vmatpush.bf16.msra.mxu2 %v2572_v7 }
  0x66   : > { %2259 = vmatmul.msk.bf16.gmra.mxu0 %vm363_vm2, %v2823_v5  ;;  %v1149_v40 = vor.u32 %v1148_v29, %v1145_v22  ;;  %v1180_v22 = vshll.u32 %v1139_v3, 16  ;;  %v1294_v38 = vor.u32 %v1293_v20, %v1290_v12  ;;  %v2281_v12 = vld [vmem:[%s2626_s11 + $0x1c] sm:$0x1]  ;;  %v2283_v20 = vld [vmem:[%s2626_s11 + $0x24] sm:$0x1] }
  0x68   : > { %v1150_v45 = vrot.slane %v1149_v40, 4  ;;  %v1297_v40 = vshll.u32 %v2277_v35, 16  ;;  %v1295_v47 = vrot.slane %v1294_v38, 4  ;;  %v1339_v35 = vshll.u32 %v2283_v20, 16 }
  0x69   : > { %2261 = vmatmul.msk.bf16.gmra.mxu1 %vm363_vm2, %v2726_v19  ;;  %2265 = vmatmul.msk.bf16.gmra.mxu3 %vm363_vm2, %v1058_v6  ;;  %v1154_v19 = vrot.slane %v1152_v41, 5  ;;  %v1141_v6 = vld [vmem:[%s2717_s7 + $0x1c] sm:$0x1]  ;;  %v1308_v41 = vor.u32 %v1307_v25, %v1304_v23 }
  0x6a   : > { %v1194_v34 = vshll.u32 %v1141_v6, 16  ;;  %v1299_v48 = vrot.slane %v1297_v40, 5 }
  0x6b   : > { %v1155_v51 = vsel %vm2663_vm5, %v1150_v45, %v1154_v19  ;;  %v1182_v45 = vrot.slane %v1180_v22, 5 }
  0x6c   : > { %v1198_v57 = vunpack.c.l.b16 %v1155_v51  ;;  %v1196_v46 = vrot.slane %v1194_v34, 5  ;;  %v1313_v51 = vrot.slane %v1311_v42, 5  ;;  %v1300_v4 = vsel %vm2663_vm5, %v1295_v47, %v1299_v48 }
  0x6d   : > { %v1183_v52 = vsel %vm2663_vm5, %v1178_v43, %v1182_v45  ;;  %v1343_v63 = vunpack.c.l.b16 %v1300_v4  ;;  %v1341_v42 = vrot.slane %v1339_v35, 5 }
  0x6e   : > { %v2858_v11 = vpack.c.b16 %v1199_v58, %v1198_v57  ;;  %v1200_v55 = vunpack.c.l.b16 %v1183_v52  ;;  %v1316_v58 = vshrl.u32 %v2280_v54, 16 }
  0x74   : > { %2263 = vmatmul.msk.bf16.gmra.mxu2 %vm363_vm2, %v2682_v13  ;;  %v1185_v13 = vshrl.u32 %v1140_v49, 16  ;;  %v1309_v49 = vrot.slane %v1308_v41, 4 }
  0x76   : > { %2266 = vmatmul.msk.bf16.vlgmr.msrb.gmra.mxu0 %vm363_vm2, %v2731_v24  ;;  %v1187_v1 = vrot.slane %v1185_v13, 4  ;;  %v2282_v13 = vld [vmem:[%s2626_s11 + $0x20] sm:$0xf]  ;;  %v1314_v57 = vsel %vm2663_vm5, %v1309_v49, %v1313_v51 }
  0x77   : > { %1427 = vmatpush.bf16.msrb.mxu0 %v2581_v10  ;;  %v1330_v28 = vshrl.u32 %v2282_v13, 16  ;;  %v1333_v60 = vshll.u32 %v2282_v13, 16  ;;  %v1344_v0 = vunpack.c.l.b16 %v1314_v57 }
  0x78   : > { %v1191_v29 = vor.u32 %v1190_v2, %v1187_v1  ;;  %v1318_v1 = vrot.slane %v1316_v58, 4  ;;  %v1321_v2 = vrot.slane %v1319_v59, 5 }
  0x79   : > { %2268 = vmatmul.msk.bf16.vlgmr.msrb.gmra.mxu1 %vm363_vm2, %v2733_v26  ;;  %2272 = vmatmul.msk.bf16.vlgmr.msrb.gmra.mxu3 %vm363_vm2, %v2737_v32  ;;  %v1332_v3 = vrot.slane %v1330_v28, 4  ;;  %v1335_v6 = vrot.slane %v1333_v60, 5  ;;  %v2885_v25 = vpack.c.b16 %v1344_v0, %v1343_v63 }
  0x7a   : > { %1450 = vmatpush.bf16.msrb.mxu1 %v2578_v9  ;;  %1496 = vmatpush.bf16.msrb.mxu3 %v2623_v18  ;;  %v1192_v19 = vrot.slane %v1191_v29, 4  ;;  %v1322_v22 = vor.u32 %v1321_v2, %v1318_v1  ;;  %v1325_v29 = vshll.u32 %v2281_v12, 16 }
  0x7b   : > { %v1336_v34 = vor.u32 %v1335_v6, %v1332_v3 }
  0x7c   : > { %v1197_v53 = vsel %vm2663_vm5, %v1192_v19, %v1196_v46  ;;  %v1323_v38 = vrot.slane %v1322_v22, 4  ;;  %v1327_v40 = vrot.slane %v1325_v29, 5 }
  0x7d   : > { %v1201_v56 = vunpack.c.l.b16 %v1197_v53  ;;  %v1337_v41 = vrot.slane %v1336_v34, 4 }
  0x7e   : > { %v1328_v46 = vsel %vm2663_vm5, %v1323_v38, %v1327_v40 }
  0x7f   : > { %v2881_v62 = vpack.c.b16 %v1201_v56, %v1200_v55  ;;  %v1342_v47 = vsel %vm2663_vm5, %v1337_v41, %v1341_v42  ;;  %v1345_v49 = vunpack.c.l.b16 %v1328_v46  ;;  %v2330_v41 = vld [vmem:[%s2646_s16 + $0x8] sm:$0xf]  ;;  %v2332_v42 = vld [vmem:[%s2646_s16 + $0x10] sm:$0xf] }
  0x84   : > { %2270 = vmatmul.msk.bf16.vlgmr.msrb.gmra.mxu2 %vm363_vm2, %v2858_v11 }
  0x85   : > { %1473 = vmatpush.bf16.msrb.mxu2 %v2602_v15 }
  0x86   : > { %2267 = vmatmul.msk.bf16.gmra.mxu0 %vm363_vm2, %v2766_v17 }
  0x89   : > { %2269 = vmatmul.msk.bf16.gmra.mxu1 %vm363_vm2, %v2770_v31  ;;  %2273 = vmatmul.msk.bf16.gmra.mxu3 %vm363_vm2, %v2774_v36 }
  0x93   : > { %v386_v23 = vpop.f32.mrf.mxu0 }
  0x94   : > { %2271 = vmatmul.msk.bf16.gmra.mxu2 %vm363_vm2, %v2881_v62 }
  0x96   : > { %v424_v27 = vpop.f32.mrf.mxu1  ;;  %2274 = vmatmul.msk.bf16.vlgmr.msra.gmra.mxu0 %vm363_vm2, %v2801_v39 }
  0x97   : > { %v425_v37 = vadd.f32 %v424_v27, %v386_v23  ;;  %1541 = vmatpush.bf16.msra.mxu0 %v2599_v14 }
  0x99   : > { %2284 = vmatmul.msk.bf16.vlgmr.msra.gmra.mxu1 %vm363_vm2, %v2885_v25  ;;  %2288 = vmatmul.msk.bf16.vlgmr.msra.gmra.mxu3 %vm363_vm2, %v2655_v30  ;;  %v1346_v30 = vunpack.c.l.b16 %v1342_v47  ;;  %v1625_v47 = vshrl.u32 %v2332_v42, 16 }
  0x9a   : > { %1586 = vmatpush.bf16.msra.mxu1 %v2607_v16  ;;  %1712 = vmatpush.bf16.msra.mxu3 %v2572_v7 }
  0x9b   : > { %v388_v43 = vpop.f32.mrf.mxu0  ;;  %v2902_v53 = vpack.c.b16 %v1346_v30, %v1345_v49 }
  0x9c   : > { %v577_v45 = vpop.f32.mrf.mxu3 }
  0x9e   : > { %v426_v19 = vpop.f32.mrf.mxu1 }
  0x9f   : > { %v427_v48 = vadd.f32 %v426_v19, %v388_v43  ;;  %v1614_v19 = vshll.u32 %v2330_v41, 16 }
  0xa3   : > { %v391_v51 = vpop.f32.mrf.mxu0 }
  0xa4   : > { %v579_v52 = vpop.f32.mrf.mxu3  ;;  %2286 = vmatmul.msk.bf16.vlgmr.msra.gmra.mxu2 %vm363_vm2, %v2731_v24 }
  0xa5   : > { %1685 = vmatpush.bf16.msra.mxu2 %v2701_v50 }
  0xa6   : > { %v429_v7 = vpop.f32.mrf.mxu1  ;;  %2275 = vmatmul.msk.bf16.gmra.mxu0 %vm363_vm2, %v2823_v5 }
  0xa7   : > { %v430_v54 = vadd.f32 %v429_v7, %v391_v51  ;;  %v527_v13 = vpop.f32.mrf.mxu2 }
  0xa8   : > { %v537_v55 = vadd.f32 %v527_v13, %v425_v37 }
  0xa9   : > { %2285 = vmatmul.msk.bf16.gmra.mxu1 %vm363_vm2, %v2902_v53  ;;  %2289 = vmatmul.msk.bf16.gmra.mxu3 %vm363_vm2, %v2689_v33 }
  0xaa   : > { %v587_v56 = vadd.f32 %v577_v45, %v537_v55  ;;  %v1611_v45 = vshrl.u32 %v2330_v41, 16  ;;  %v2331_v55 = vld [vmem:[%s2646_s16 + $0xc] sm:$0x1] }
  0xab   : > { %v393_v4 = vpop.f32.mrf.mxu0 }
  0xac   : > { %v582_v57 = vpop.f32.mrf.mxu3  ;;  %v1613_v51 = vrot.slane %v1611_v45, 4 }
  0xae   : > { %v431_v58 = vpop.f32.mrf.mxu1 }
  0xaf   : > { %v432_v59 = vadd.f32 %v431_v58, %v393_v4  ;;  %v529_v28 = vpop.f32.mrf.mxu2  ;;  %v2306_v58 = vld [vmem:[%s2646_s16 + $0x8] sm:$0xf] }
  0xb0   : > { %v538_v60 = vadd.f32 %v529_v28, %v427_v48 }
  0xb2   : > { %v588_v63 = vadd.f32 %v579_v52, %v538_v60  ;;  %v1616_v52 = vrot.slane %v1614_v19, 5 }
  0xb3   : > { %v627_v0 = vpop.f32.mrf.mxu0 }
  0xb4   : > { %v584_v1 = vpop.f32.mrf.mxu3  ;;  %2287 = vmatmul.msk.bf16.gmra.mxu2 %vm363_vm2, %v2766_v17  ;;  %v637_v2 = vadd.f32 %v627_v0, %v587_v56  ;;  %v2333_v56 = vld [vmem:[%s2646_s16 + $0x14] sm:$0x1]  ;;  %v1617_v28 = vor.u32 %v1616_v52, %v1613_v51  ;;  %v2391_v0 = vld [vmem:[%s2717_s7 + $0xc] sm:$0xf0] }
  0xb6   : > { %v731_v3 = vpop.f32.mrf.mxu1  ;;  %2290 = vmatmul.msk.bf16.vlgmr.msrb.gmra.mxu0 %vm363_vm2, %v2733_v26 }
  0xb7   : > { %v741_v6 = vadd.f32 %v731_v3, %v637_v2  ;;  %v532_v33 = vpop.f32.mrf.mxu2  ;;  %1731 = vmatpush.bf16.msrb.mxu0 %v2575_v8  ;;  %v1634_v3 = vshll.u32 %v2333_v56, 16  ;;  %v2326_v56 = vld [vmem:[%s2717_s7 + $0x18] sm:$0xf] }
  0xb8   : > { %v539_v12 = vadd.f32 %v532_v33, %v430_v54  ;;  %v1627_v54 = vrot.slane %v1625_v47, 4 }
  0xb9   : > { %2292 = vmatmul.msk.bf16.vlgmr.msrb.gmra.mxu1 %vm363_vm2, %v2760_v61  ;;  %2296 = vmatmul.msk.bf16.vlgmr.msrb.gmra.mxu3 %vm363_vm2, %v2801_v39 }
  0xba   : > { %1750 = vmatpush.bf16.msrb.mxu1 %v2581_v10  ;;  %1796 = vmatpush.bf16.msrb.mxu3 %v2602_v15  ;;  %v589_v20 = vadd.f32 %v582_v57, %v539_v12 }
  0xbb   : > { %v629_v23 = vpop.f32.mrf.mxu0 }
  0xbc   : > { %v833_v27 = vpop.f32.mrf.mxu3  ;;  %v638_v22 = vadd.f32 %v629_v23, %v588_v63  ;;  %v2322_v63 = vld [vmem:[%s2717_s7 + $0x8] sm:$0xf] }
  0xbd   : > { %v2941_v23 = vor.u32 %v2391_v0, %v2322_v63 }
  0xbe   : > { %v733_v29 = vpop.f32.mrf.mxu1 }
  0xbf   : > { %v742_v34 = vadd.f32 %v733_v29, %v638_v22  ;;  %v534_v35 = vpop.f32.mrf.mxu2 }
  0xc0   : > { %v540_v61 = vadd.f32 %v534_v35, %v432_v59  ;;  %v2388_v59 = vld [vmem:[%s2646_s16 + $0xc] sm:$0xf0] }
  0xc2   : > { %v590_v37 = vadd.f32 %v584_v1, %v540_v61  ;;  %v1620_v1 = vshll.u32 %v2331_v55, 16  ;;  %v1636_v61 = vrot.slane %v1634_v3, 5 }
  0xc3   : > { %v632_v8 = vpop.f32.mrf.mxu0 }
  0xc4   : > { %v835_v38 = vpop.f32.mrf.mxu3  ;;  %2294 = vmatmul.msk.bf16.vlgmr.msrb.gmra.mxu2 %vm363_vm2, %v2737_v32  ;;  %v639_v40 = vadd.f32 %v632_v8, %v589_v20  ;;  %v2336_v8 = vld [vmem:[%s2646_s16 + $0x20] sm:$0xf] }
  0xc5   : > { %1773 = vmatpush.bf16.msrb.mxu2 %v2578_v9  ;;  %v1628_v9 = vshll.u32 %v2332_v42, 16  ;;  %v1653_v45 = vshrl.u32 %v2336_v8, 16  ;;  %v1656_v19 = vshll.u32 %v2336_v8, 16 }
  0xc6   : > { %v736_v10 = vpop.f32.mrf.mxu1  ;;  %2291 = vmatmul.msk.bf16.gmra.mxu0 %vm363_vm2, %v2770_v31 }
  0xc7   : > { %v743_v15 = vadd.f32 %v736_v10, %v639_v40  ;;  %v783_v43 = vpop.f32.mrf.mxu2  ;;  %v1630_v13 = vrot.slane %v1628_v9, 5  ;;  %v1655_v51 = vrot.slane %v1653_v45, 4  ;;  %v1658_v52 = vrot.slane %v1656_v19, 5 }
  0xc8   : > { %v793_v46 = vadd.f32 %v783_v43, %v741_v6  ;;  %v2307_v6 = vor.u32 %v2388_v59, %v2306_v58 }
  0xc9   : > { %2293 = vmatmul.msk.bf16.gmra.mxu1 %vm363_vm2, %v2797_v21  ;;  %2297 = vmatmul.msk.bf16.gmra.mxu3 %vm363_vm2, %v2823_v5  ;;  %v1631_v2 = vor.u32 %v1630_v13, %v1627_v54  ;;  %v2310_v13 = vld [vmem:[%s2646_s16 + $0x18] sm:$0xf] }
  0xca   : > { %v843_v48 = vadd.f32 %v833_v27, %v793_v46  ;;  %v1618_v27 = vrot.slane %v1617_v28, 4  ;;  %v1659_v28 = vor.u32 %v1658_v52, %v1655_v51 }
  0xcb   : > { %v634_v49 = vpop.f32.mrf.mxu0  ;;  %v1632_v35 = vrot.slane %v1631_v2, 4 }
  0xcc   : > { %v838_v30 = vpop.f32.mrf.mxu3  ;;  %v640_v21 = vadd.f32 %v634_v49, %v590_v37  ;;  %v2334_v37 = vld [vmem:[%s2646_s16 + $0x18] sm:$0xf] }
  0xcd   : > { %v1637_v41 = vsel %vm2663_vm5, %v1632_v35, %v1636_v61  ;;  %v1639_v42 = vshrl.u32 %v2334_v37, 16  ;;  %v1642_v43 = vshll.u32 %v2334_v37, 16 }
  0xce   : > { %v738_v7 = vpop.f32.mrf.mxu1 }
  0xcf   : > { %v744_v4 = vadd.f32 %v738_v7, %v640_v21  ;;  %v785_v57 = vpop.f32.mrf.mxu2  ;;  %v1644_v49 = vrot.slane %v1642_v43, 5  ;;  %v2335_v21 = vld [vmem:[%s2646_s16 + $0x1c] sm:$0x1]  ;;  %v2337_v7 = vld [vmem:[%s2646_s16 + $0x24] sm:$0x1] }
  0xd0   : > { %v794_v60 = vadd.f32 %v785_v57, %v742_v34  ;;  %v1622_v34 = vrot.slane %v1620_v1, 5  ;;  %v2392_v57 = vld [vmem:[%s2717_s7 + $0x1c] sm:$0xf0]  ;;  %v1648_v59 = vshll.u32 %v2335_v21, 16 }
  0xd1   : > { %v2971_v3 = vor.u32 %v2392_v57, %v2326_v56 }
  0xd2   : > { %v844_v33 = vadd.f32 %v835_v38, %v794_v60  ;;  %v1623_v10 = vsel %vm2663_vm5, %v1618_v27, %v1622_v34  ;;  %v1662_v60 = vshll.u32 %v2337_v7, 16  ;;  %v1660_v27 = vrot.slane %v1659_v28, 4 }
  0xd3   : > { %v937_v12 = vpop.f32.mrf.mxu0  ;;  %v1666_v9 = vunpack.c.l.b16 %v1623_v10 }
  0xd4   : > { %v840_v20 = vpop.f32.mrf.mxu3  ;;  %2295 = vmatmul.msk.bf16.gmra.mxu2 %vm363_vm2, %v2774_v36  ;;  %v2945_v22 = vadd.f32 %v937_v12, %v843_v48  ;;  %v1641_v48 = vrot.slane %v1639_v42, 4  ;;  %v1650_v12 = vrot.slane %v1648_v59, 5  ;;  %v1664_v34 = vrot.slane %v1662_v60, 5  ;;  %v2357_v60 = vld [vmem:[%s2717_s7 + $0xc] sm:$0x1] }
  0xd6   : > { %v960_v29 = vpop.f32.mrf.mxu1  ;;  %2312 = vmatmul.msk.bf16.vlgmr.msra.gmra.mxu0 %vm363_vm2, %v2307_v6  ;;  %v1645_v58 = vor.u32 %v1644_v49, %v1641_v48  ;;  %v1665_v37 = vsel %vm2663_vm5, %v1660_v27, %v1664_v34  ;;  %v2358_v49 = vld [vmem:[%s2717_s7 + $0x10] sm:$0xf]  ;;  %v1899_v27 = vshll.u32 %v2357_v60, 16 }
  0xd7   : > { %v788_v40 = vpop.f32.mrf.mxu2  ;;  %1819 = vmatpush.bf16.msra.mxu0 %v2623_v18  ;;  %v1669_v42 = vunpack.c.l.b16 %v1665_v37 }
  0xd8   : > { %v795_v38 = vadd.f32 %v788_v40, %v743_v15 }
  0xd9   : > { %2328 = vmatmul.msk.bf16.vlgmr.msra.gmra.mxu1 %vm363_vm2, %v2941_v23  ;;  %2340 = vmatmul.msk.bf16.vlgmr.msra.gmra.mxu3 %vm363_vm2, %v2733_v26 }
  0xda   : > { %1842 = vmatpush.bf16.msra.mxu1 %v2599_v14  ;;  %1964 = vmatpush.bf16.msra.mxu3 %v2701_v50  ;;  %v845_v18 = vadd.f32 %v838_v30, %v795_v38  ;;  %v1667_v14 = vunpack.c.l.b16 %v1637_v41  ;;  %v2389_v50 = vld [vmem:[%s2646_s16 + $0x1c] sm:$0xf0] }
  0xdb   : > { %v939_v26 = vpop.f32.mrf.mxu0  ;;  %v2311_v63 = vor.u32 %v2389_v50, %v2310_v13 }
  0xdc   : > { %v1074_v15 = vpop.f32.mrf.mxu3  ;;  %v2961_v46 = vadd.f32 %v939_v26, %v844_v33  ;;  %v2967_v30 = vpack.c.b16 %v1667_v14, %v1666_v9  ;;  %v1646_v33 = vrot.slane %v1645_v58, 4 }
  0xde   : > { %v962_v47 = vpop.f32.mrf.mxu1  ;;  %v1651_v61 = vsel %vm2663_vm5, %v1646_v33, %v1650_v12 }
  0xdf   : > { %v790_v54 = vpop.f32.mrf.mxu2  ;;  %v1668_v41 = vunpack.c.l.b16 %v1651_v61 }
  0xe0   : > { %v796_v55 = vadd.f32 %v790_v54, %v744_v4 }
  0xe1   : > { %v2989_v45 = vpack.c.b16 %v1669_v42, %v1668_v41  ;;  %v2360_v41 = vld [vmem:[%s2717_s7 + $0x18] sm:$0xf]  ;;  %v2362_v42 = vld [vmem:[%s2717_s7 + $0x20] sm:$0xf] }
  0xe2   : > { %v846_v0 = vadd.f32 %v840_v20, %v796_v55  ;;  %v1907_v55 = vshll.u32 %v2358_v49, 16 }
  0xe3   : > { %v942_v1 = vpop.f32.mrf.mxu0 }
  0xe4   : > { %v1076_v2 = vpop.f32.mrf.mxu3  ;;  %2338 = vmatmul.msk.bf16.vlgmr.msra.gmra.mxu2 %vm363_vm2, %v2967_v30  ;;  %v2975_v6 = vadd.f32 %v942_v1, %v845_v18 }
  0xe5   : > { %1865 = vmatpush.bf16.msra.mxu2 %v2607_v16 }
  0xe6   : > { %v965_v4 = vpop.f32.mrf.mxu1  ;;  %2313 = vmatmul.msk.bf16.gmra.mxu0 %vm363_vm2, %v2311_v63  ;;  %v2359_v63 = vld [vmem:[%s2717_s7 + $0x14] sm:$0x1] }
  0xe7   : > { %v979_v35 = vpop.f32.mrf.mxu2 }
  0xe8   : > { %v980_v20 = vadd.f32 %v979_v35, %v960_v29  ;;  %v1913_v35 = vshll.u32 %v2359_v63, 16 }
  0xe9   : > { %2329 = vmatmul.msk.bf16.gmra.mxu1 %vm363_vm2, %v2971_v3  ;;  %2341 = vmatmul.msk.bf16.gmra.mxu3 %vm363_vm2, %v2770_v31 }
  0xea   : > { %v1084_v8 = vadd.f32 %v1074_v15, %v980_v20 }
  0xeb   : > { %v944_v40 = vpop.f32.mrf.mxu0 }
  0xec   : > { %v1079_v38 = vpop.f32.mrf.mxu3  ;;  %v2987_v16 = vadd.f32 %v944_v40, %v846_v0 }
  0xee   : > { %v967_v10 = vpop.f32.mrf.mxu1 }
  0xef   : > { %v981_v43 = vpop.f32.mrf.mxu2 }
  0xf0   : > { %v982_v29 = vadd.f32 %v981_v43, %v962_v47  ;;  %v2356_v47 = vld [vmem:[%s2717_s7 + $0x8] sm:$0xf] }
  0xf1   : > { %v1890_v7 = vshrl.u32 %v2356_v47, 16  ;;  %v1893_v54 = vshll.u32 %v2356_v47, 16 }
  0xf2   : > { %v1085_v31 = vadd.f32 %v1076_v2, %v982_v29 }
  0xf3   : > { %v1097_v19 = vpop.f32.mrf.mxu0  ;;  %v1895_v58 = vrot.slane %v1893_v54, 5 }
  0xf4   : > { %v1081_v18 = vpop.f32.mrf.mxu3  ;;  %2339 = vmatmul.msk.bf16.gmra.mxu2 %vm363_vm2, %v2989_v45  ;;  %v1107_v26 = vadd.f32 %v1097_v19, %v1084_v8 }
  0xf6   : > { %v1120_v15 = vpop.f32.mrf.mxu1  ;;  %2342 = vmatmul.msk.bf16.vlgmr.msrb.gmra.mxu0 %vm363_vm2, %v2731_v24  ;;  %v1904_v24 = vshrl.u32 %v2358_v49, 16 }
  0xf7   : > { %v1130_v9 = vadd.f32 %v1120_v15, %v1107_v26  ;;  %v984_v14 = vpop.f32.mrf.mxu2  ;;  %v1932_v26 = vshrl.u32 %v2362_v42, 16  ;;  %v1935_v15 = vshll.u32 %v2362_v42, 16 }
  0xf8   : > { %v985_v48 = vadd.f32 %v984_v14, %v965_v4  ;;  %v1906_v28 = vrot.slane %v1904_v24, 4 }
  0xf9   : > { %2344 = vmatmul.msk.bf16.vlgmr.msrb.gmra.mxu1 %vm363_vm2, %v2858_v11  ;;  %2348 = vmatmul.msk.bf16.vlgmr.msrb.gmra.mxu3 %vm363_vm2, %v2801_v39  ;;  %v1892_v11 = vrot.slane %v1890_v7, 4  ;;  %v1909_v39 = vrot.slane %v1907_v55, 5  ;;  %v1937_v7 = vrot.slane %v1935_v15, 5 }
  0xfa   : > { %v1086_v51 = vadd.f32 %v1079_v38, %v985_v48  ;;  %v1915_v38 = vrot.slane %v1913_v35, 5 }
  0xfb   : > { %v1099_v52 = vpop.f32.mrf.mxu0  ;;  %v1896_v4 = vor.u32 %v1895_v58, %v1892_v11  ;;  %v1910_v34 = vor.u32 %v1909_v39, %v1906_v28 }
  0xfc   : > { %v1242_v21 = vpop.f32.mrf.mxu3  ;;  %v1108_v13 = vadd.f32 %v1099_v52, %v1085_v31 }
  0xfd   : > { %v1897_v37 = vrot.slane %v1896_v4, 4  ;;  %v1911_v40 = vrot.slane %v1910_v34, 4 }
  0xfe   : > { %v1122_v50 = vpop.f32.mrf.mxu1 }
  0xff   : > { %v1131_v56 = vadd.f32 %v1122_v50, %v1108_v13  ;;  %v986_v57 = vpop.f32.mrf.mxu2  ;;  %v2361_v13 = vld [vmem:[%s2717_s7 + $0x1c] sm:$0x1]  ;;  %v2363_v50 = vld [vmem:[%s2717_s7 + $0x24] sm:$0x1] }
 0x100   : > { %v987_v59 = vadd.f32 %v986_v57, %v967_v10  ;;  %v1927_v28 = vshll.u32 %v2361_v13, 16  ;;  %v1941_v39 = vshll.u32 %v2363_v50, 16 }
 0x102   : > { %v1087_v0 = vadd.f32 %v1081_v18, %v987_v59  ;;  %v1918_v18 = vshrl.u32 %v2360_v41, 16 }
 0x103   : > { %v1102_v1 = vpop.f32.mrf.mxu0 }
 0x104   : > { %v1244_v2 = vpop.f32.mrf.mxu3  ;;  %2346 = vmatmul.msk.bf16.vlgmr.msrb.gmra.mxu2 %vm363_vm2, %v2737_v32  ;;  %v1109_v33 = vadd.f32 %v1102_v1, %v1086_v51  ;;  %v1901_v32 = vrot.slane %v1899_v27, 5  ;;  %v1920_v51 = vrot.slane %v1918_v18, 4 }
 0x106   : > { %v1125_v12 = vpop.f32.mrf.mxu1  ;;  %2343 = vmatmul.msk.bf16.gmra.mxu0 %vm363_vm2, %v2766_v17  ;;  %v1902_v17 = vsel %vm2663_vm5, %v1897_v37, %v1901_v32 }
 0x107   : > { %v1132_v20 = vadd.f32 %v1125_v12, %v1109_v33  ;;  %v1219_v61 = vpop.f32.mrf.mxu2  ;;  %v1945_v47 = vunpack.c.l.b16 %v1902_v17  ;;  %v1943_v33 = vrot.slane %v1941_v39, 5 }
 0x108   : > { %v1229_v8 = vadd.f32 %v1219_v61, %v1130_v9 }
 0x109   : > { %2345 = vmatmul.msk.bf16.gmra.mxu1 %vm363_vm2, %v2881_v62  ;;  %2349 = vmatmul.msk.bf16.gmra.mxu3 %vm363_vm2, %v2823_v5  ;;  %v1916_v62 = vsel %vm2663_vm5, %v1911_v40, %v1915_v38  ;;  %v1921_v5 = vshll.u32 %v2360_v41, 16 }
 0x10a   : > { %v1252_v10 = vadd.f32 %v1242_v21, %v1229_v8  ;;  %v1946_v49 = vunpack.c.l.b16 %v1916_v62  ;;  %v1934_v21 = vrot.slane %v1932_v26, 4 }
 0x10b   : > { %v1104_v43 = vpop.f32.mrf.mxu0  ;;  %v1923_v52 = vrot.slane %v1921_v5, 5 }
 0x10c   : > { %v1247_v29 = vpop.f32.mrf.mxu3  ;;  %v1110_v31 = vadd.f32 %v1104_v43, %v1087_v0  ;;  %v1949_v58 = vpack.c.b16 %v1946_v49, %v1945_v47 }
 0x10d   : > { %v1924_v59 = vor.u32 %v1923_v52, %v1920_v51 }
 0x10e   : > { %v1127_v19 = vpop.f32.mrf.mxu1 }
 0x10f   : > { %v1133_v9 = vadd.f32 %v1127_v19, %v1110_v31  ;;  %v1221_v14 = vpop.f32.mrf.mxu2  ;;  %v1925_v1 = vrot.slane %v1924_v59, 4 }
 0x110   : > { %v1230_v48 = vadd.f32 %v1221_v14, %v1131_v56  ;;  %v1938_v56 = vor.u32 %v1937_v7, %v1934_v21 }
 0x112   : > { %v1253_v54 = vadd.f32 %v1244_v2, %v1230_v48  ;;  %v1929_v2 = vrot.slane %v1927_v28, 5  ;;  %v1939_v4 = vrot.slane %v1938_v56, 4 }
 0x113   : > { %v1265_v24 = vpop.f32.mrf.mxu0 }
 0x114   : > { %v1249_v55 = vpop.f32.mrf.mxu3  ;;  %2347 = vmatmul.msk.bf16.gmra.mxu2 %vm363_vm2, %v2774_v36  ;;  %v1275_v57 = vadd.f32 %v1265_v24, %v1252_v10 }
 0x116   : > { %v1364_v11 = vpop.f32.mrf.mxu1  ;;  %2350 = vmatmul.msk.bf16.vlgmr.msra.gmra.mxu0 %vm363_vm2, %v2885_v25  ;;  %v1930_v25 = vsel %vm2663_vm5, %v1925_v1, %v1929_v2 }
 0x117   : > { %v3021_v60 = vadd.f32 %v1364_v11, %v1275_v57  ;;  %v1224_v63 = vpop.f32.mrf.mxu2  ;;  %v1947_v40 = vunpack.c.l.b16 %v1930_v25 }
 0x118   : > { %v1231_v0 = vadd.f32 %v1224_v63, %v1132_v20 }
 0x119   : > { %2352 = vmatmul.msk.bf16.vlgmr.msra.gmra.mxu1 %vm363_vm2, %v2941_v23  ;;  %v1378_v36 = vmax.f32 %v2945_v22, %v3021_v60  ;;  %2364 = vmatmul.msk.bf16.vlgmr.msra.gmra.mxu3 %vm363_vm2, %v1949_v58  ;;  %v1944_v23 = vsel %vm2663_vm5, %v1939_v4, %v1943_v33 }
 0x11a   : > { %v1254_v12 = vadd.f32 %v1247_v29, %v1231_v0  ;;  %v1948_v38 = vunpack.c.l.b16 %v1944_v23 }
 0x11b   : > { %v1267_v27 = vpop.f32.mrf.mxu0 }
 0x11c   : > { %v1410_v34 = vpop.f32.mrf.mxu3  ;;  %v1276_v35 = vadd.f32 %v1267_v27, %v1253_v54  ;;  %v1950_v31 = vpack.c.b16 %v1948_v38, %v1947_v40 }
 0x11e   : > { %v1366_v61 = vpop.f32.mrf.mxu1 }
 0x11f   : > { %v3034_v20 = vadd.f32 %v1366_v61, %v1276_v35  ;;  %v1226_v37 = vpop.f32.mrf.mxu2 }
 0x120   : > { %v1232_v8 = vadd.f32 %v1226_v37, %v1133_v9 }
 0x121   : > { %v1379_v32 = vmax.f32 %v2961_v46, %v3034_v20 }
 0x122   : > { %v1255_v10 = vadd.f32 %v1249_v55, %v1232_v8 }
 0x123   : > { %v1270_v41 = vpop.f32.mrf.mxu0 }
 0x124   : > { %v1412_v42 = vpop.f32.mrf.mxu3  ;;  %2354 = vmatmul.msk.bf16.vlgmr.msra.gmra.mxu2 %vm363_vm2, %v2967_v30  ;;  %v1277_v43 = vadd.f32 %v1270_v41, %v1254_v12 }
 0x126   : > { %v1369_v29 = vpop.f32.mrf.mxu1  ;;  %2351 = vmatmul.msk.bf16.gmra.mxu0 %vm363_vm2, %v2902_v53 }
 0x127   : > { %v3040_v44 = vadd.f32 %v1369_v29, %v1277_v43  ;;  %v1391_v19 = vpop.f32.mrf.mxu2 }
 0x128   : > { %v1411_v17 = vadd.f32 %v1410_v34, %v1391_v19 }
 0x129   : > { %2353 = vmatmul.msk.bf16.gmra.mxu1 %vm363_vm2, %v2971_v3  ;;  %v1380_v62 = vmax.f32 %v2975_v6, %v3040_v44  ;;  %2365 = vmatmul.msk.bf16.gmra.mxu3 %vm363_vm2, %v1950_v31 }
 0x12b   : > { %v1272_v18 = vpop.f32.mrf.mxu0 }
 0x12c   : > { %v1415_v30 = vpop.f32.mrf.mxu3  ;;  %v1278_v5 = vadd.f32 %v1272_v18, %v1255_v10 }
 0x12e   : > { %v1371_v26 = vpop.f32.mrf.mxu1 }
 0x12f   : > { %v3049_v15 = vadd.f32 %v1371_v26, %v1278_v5  ;;  %v1393_v9 = vpop.f32.mrf.mxu2 }
 0x130   : > { %v1413_v14 = vadd.f32 %v1412_v42, %v1393_v9 }
 0x131   : > { %v1381_v53 = vmax.f32 %v2987_v16, %v3049_v15 }
 0x133   : > { %v1429_v48 = vpop.f32.mrf.mxu0 }
 0x134   : > { %v1417_v47 = vpop.f32.mrf.mxu3  ;;  %2355 = vmatmul.msk.bf16.gmra.mxu2 %vm363_vm2, %v2989_v45  ;;  %v1439_v3 = vadd.f32 %v1429_v48, %v1411_v17 }
 0x136   : > { %v1452_v49 = vpop.f32.mrf.mxu1 }
 0x137   : > { %v1462_v51 = vadd.f32 %v1452_v49, %v1439_v3  ;;  %v1396_v52 = vpop.f32.mrf.mxu2 }
 0x138   : > { %v1416_v21 = vadd.f32 %v1415_v30, %v1396_v52 }
 0x13b   : > { %v1431_v7 = vpop.f32.mrf.mxu0 }
 0x13c   : > { %v1498_v54 = vpop.f32.mrf.mxu3  ;;  %v1440_v13 = vadd.f32 %v1431_v7, %v1413_v14 }
 0x13e   : > { %v1454_v50 = vpop.f32.mrf.mxu1 }
 0x13f   : > { %v1463_v24 = vadd.f32 %v1454_v50, %v1440_v13  ;;  %v1398_v55 = vpop.f32.mrf.mxu2 }
 0x140   : > { %v1418_v57 = vadd.f32 %v1417_v47, %v1398_v55 }
 0x143   : > { %v1434_v11 = vpop.f32.mrf.mxu0 }
 0x144   : > { %v1500_v58 = vpop.f32.mrf.mxu3  ;;  %v1441_v59 = vadd.f32 %v1434_v11, %v1416_v21 }
 0x146   : > { %v1457_v28 = vpop.f32.mrf.mxu1 }
 0x147   : > { %v1464_v56 = vadd.f32 %v1457_v28, %v1441_v59  ;;  %v1475_v39 = vpop.f32.mrf.mxu2 }
 0x148   : > { %v1485_v63 = vadd.f32 %v1475_v39, %v1462_v51 }
 0x14a   : > { %v1508_v45 = vadd.f32 %v1498_v54, %v1485_v63 }
 0x14b   : > { %v1436_v0 = vpop.f32.mrf.mxu0 }
 0x14c   : > { %v1503_v1 = vpop.f32.mrf.mxu3  ;;  %v1442_v2 = vadd.f32 %v1436_v0, %v1418_v57 }
 0x14e   : > { %v1459_v4 = vpop.f32.mrf.mxu1 }
 0x14f   : > { %v1465_v33 = vadd.f32 %v1459_v4, %v1442_v2  ;;  %v1477_v12 = vpop.f32.mrf.mxu2 }
 0x150   : > { %v1486_v27 = vadd.f32 %v1477_v12, %v1463_v24 }
 0x152   : > { %v1509_v34 = vadd.f32 %v1500_v58, %v1486_v27 }
 0x153   : > { %v1543_v35 = vpop.f32.mrf.mxu0 }
 0x154   : > { %v1505_v61 = vpop.f32.mrf.mxu3  ;;  %v1553_v25 = vadd.f32 %v1543_v35, %v1508_v45 }
 0x156   : > { %v1588_v23 = vpop.f32.mrf.mxu1 }
 0x157   : > { %v1598_v37 = vadd.f32 %v1588_v23, %v1553_v25  ;;  %v1480_v8 = vpop.f32.mrf.mxu2 }
 0x158   : > { %v1487_v40 = vadd.f32 %v1480_v8, %v1464_v56 }
 0x15a   : > { %v1510_v38 = vadd.f32 %v1503_v1, %v1487_v40 }
 0x15b   : > { %v1545_v10 = vpop.f32.mrf.mxu0 }
 0x15c   : > { %v1714_v41 = vpop.f32.mrf.mxu3  ;;  %v1554_v42 = vadd.f32 %v1545_v10, %v1509_v34 }
 0x15e   : > { %v1590_v43 = vpop.f32.mrf.mxu1 }
 0x15f   : > { %v1599_v29 = vadd.f32 %v1590_v43, %v1554_v42  ;;  %v1482_v31 = vpop.f32.mrf.mxu2 }
 0x160   : > { %v1488_v19 = vadd.f32 %v1482_v31, %v1465_v33 }
 0x162   : > { %v1511_v17 = vadd.f32 %v1505_v61, %v1488_v19 }
 0x163   : > { %v1548_v18 = vpop.f32.mrf.mxu0 }
 0x164   : > { %v1716_v30 = vpop.f32.mrf.mxu3  ;;  %v1555_v5 = vadd.f32 %v1548_v18, %v1510_v38 }
 0x166   : > { %v1593_v26 = vpop.f32.mrf.mxu1 }
 0x167   : > { %v1600_v9 = vadd.f32 %v1593_v26, %v1555_v5  ;;  %v1687_v14 = vpop.f32.mrf.mxu2 }
 0x168   : > { %v1697_v48 = vadd.f32 %v1687_v14, %v1598_v37 }
 0x16a   : > { %v3058_v47 = vmax.f32 %v1378_v36, %v1697_v48 }
 0x16b   : > { %v1550_v3 = vpop.f32.mrf.mxu0 }
 0x16c   : > { %v1719_v49 = vpop.f32.mrf.mxu3  ;;  %v1556_v51 = vadd.f32 %v1550_v3, %v1511_v17 }
 0x16e   : > { %v1595_v52 = vpop.f32.mrf.mxu1 }
 0x16f   : > { %v1601_v21 = vadd.f32 %v1595_v52, %v1556_v51  ;;  %v1689_v7 = vpop.f32.mrf.mxu2 }
 0x170   : > { %v1698_v54 = vadd.f32 %v1689_v7, %v1599_v29 }
 0x172   : > { %v3063_v13 = vmax.f32 %v1379_v32, %v1698_v54 }
 0x173   : > { %v1733_v50 = vpop.f32.mrf.mxu0 }
 0x174   : > { %v1721_v24 = vpop.f32.mrf.mxu3  ;;  %v1734_v44 = vadd.f32 %v1733_v50, %v1714_v41 }
 0x176   : > { %v1752_v55 = vpop.f32.mrf.mxu1 }
 0x177   : > { %v1692_v57 = vpop.f32.mrf.mxu2  ;;  %v1762_v4 = vadd.f32 %v1752_v55, %v1734_v44 }
 0x178   : > { %v1699_v11 = vadd.f32 %v1692_v57, %v1600_v9  ;;  %v2446_v9 = vld [vmem:[%s3107_s5] ss:$0 sm:$0xff] }
 0x17a   : > { %v3068_v22 = vmax.f32 %v1380_v62, %v1699_v11 }
 0x17b   : > { %v1735_v60 = vpop.f32.mrf.mxu0 }
 0x17c   : > { %v1798_v36 = vpop.f32.mrf.mxu3  ;;  %v1736_v27 = vadd.f32 %v1735_v60, %v1716_v30 }
 0x17e   : > { %v1754_v59 = vpop.f32.mrf.mxu1 }
 0x17f   : > { %v1694_v58 = vpop.f32.mrf.mxu2 }
 0x180   : > { %v1700_v28 = vadd.f32 %v1694_v58, %v1601_v21 }
 0x182   : > { %v3073_v46 = vmax.f32 %v1381_v53, %v1700_v28  ;;  %v1763_v53 = vadd.f32 %v1754_v59, %v1736_v27 }
 0x183   : > { %v1738_v20 = vpop.f32.mrf.mxu0 }
 0x184   : > { %v1800_v32 = vpop.f32.mrf.mxu3  ;;  %v1739_v23 = vadd.f32 %v1738_v20, %v1719_v49 }
 0x186   : > { %v1757_v39 = vpop.f32.mrf.mxu1 }
 0x187   : > { %v1775_v56 = vpop.f32.mrf.mxu2  ;;  %v1764_v41 = vadd.f32 %v1757_v39, %v1739_v23 }
 0x188   : > { %v1785_v33 = vadd.f32 %v1775_v56, %v1762_v4 }
 0x18a   : > { %v1808_v15 = vadd.f32 %v1798_v36, %v1785_v33 }
 0x18b   : > { %v1740_v63 = vpop.f32.mrf.mxu0 }
 0x18c   : > { %v1803_v0 = vpop.f32.mrf.mxu3  ;;  %v1741_v17 = vadd.f32 %v1740_v63, %v1721_v24 }
 0x18e   : > { %v1759_v6 = vpop.f32.mrf.mxu1 }
 0x18f   : > { %v1777_v45 = vpop.f32.mrf.mxu2  ;;  %v1765_v3 = vadd.f32 %v1759_v6, %v1741_v17 }
 0x190   : > { %v1786_v25 = vadd.f32 %v1777_v45, %v1763_v53 }
 0x192   : > { %v1809_v38 = vadd.f32 %v1800_v32, %v1786_v25 }
 0x193   : > { %v1821_v1 = vpop.f32.mrf.mxu0 }
 0x194   : > { %v1805_v2 = vpop.f32.mrf.mxu3  ;;  %v1831_v34 = vadd.f32 %v1821_v1, %v1808_v15 }
 0x196   : > { %v1844_v12 = vpop.f32.mrf.mxu1 }
 0x197   : > { %v1780_v62 = vpop.f32.mrf.mxu2  ;;  %v1854_v37 = vadd.f32 %v1844_v12, %v1831_v34 }
 0x198   : > { %v1787_v43 = vadd.f32 %v1780_v62, %v1764_v41 }
 0x19a   : > { %v1810_v5 = vadd.f32 %v1803_v0, %v1787_v43 }
 0x19b   : > { %v1823_v35 = vpop.f32.mrf.mxu0 }
 0x19c   : > { %v1966_v61 = vpop.f32.mrf.mxu3  ;;  %v1832_v42 = vadd.f32 %v1823_v35, %v1809_v38 }
 0x19e   : > { %v1846_v8 = vpop.f32.mrf.mxu1 }
 0x19f   : > { %v1782_v16 = vpop.f32.mrf.mxu2  ;;  %v1855_v18 = vadd.f32 %v1846_v8, %v1832_v42 }
 0x1a0   : > { %v1788_v52 = vadd.f32 %v1782_v16, %v1765_v3 }
 0x1a2   : > { %v1811_v11 = vadd.f32 %v1805_v2, %v1788_v52 }
 0x1a3   : > { %v1826_v29 = vpop.f32.mrf.mxu0 }
 0x1a4   : > { %v1968_v19 = vpop.f32.mrf.mxu3  ;;  %v1833_v49 = vadd.f32 %v1826_v29, %v1810_v5 }
 0x1a6   : > { %v1849_v48 = vpop.f32.mrf.mxu1 }
 0x1a7   : > { %v1867_v40 = vpop.f32.mrf.mxu2  ;;  %v1856_v54 = vadd.f32 %v1849_v48, %v1833_v49 }
 0x1a8   : > { %v1877_v10 = vadd.f32 %v1867_v40, %v1854_v37 }
 0x1aa   : > { %v1976_v31 = vadd.f32 %v1966_v61, %v1877_v10 }
 0x1ab   : > { %v1828_v50 = vpop.f32.mrf.mxu0 }
 0x1ac   : > { %v1980_v26 = vmax.f32 %v3058_v47, %v1976_v31  ;;  %v1971_v47 = vpop.f32.mrf.mxu3  ;;  %v1834_v58 = vadd.f32 %v1828_v50, %v1811_v11 }
 0x1ae   : > { %v1988_v21 = vadd.f32 %v2446_v9, %v1980_v26  ;;  %v1851_v28 = vpop.f32.mrf.mxu1 }
 0x1af   : > { %v1869_v30 = vpop.f32.mrf.mxu2 }
 0x1b0   : > { %v1878_v14 = vadd.f32 %v1869_v30, %v1855_v18  ;;  %v1992_v57 = vmax.f32 %v1988_v21, 0.0 }
 0x1b2   : > { %v1977_v51 = vadd.f32 %v1968_v19, %v1878_v14 }
 0x1b4   : > { %v1981_v7 = vmax.f32 %v3063_v13, %v1977_v51  ;;  %v1857_v13 = vadd.f32 %v1851_v28, %v1834_v58  ;;  %v1973_v63 = vpop.f32.mrf.mxu3 }
 0x1b6   : > { %v1989_v24 = vadd.f32 %v2446_v9, %v1981_v7 }
 0x1b7   : > { %v1872_v55 = vpop.f32.mrf.mxu2 }
 0x1b8   : > { %v1993_v60 = vmax.f32 %v1989_v24, 0.0  ;;  %v1879_v36 = vadd.f32 %v1872_v55, %v1856_v54 }
 0x1ba   : > { %v2396_v59 = vpack.c.bf16 %v1993_v60, %v1992_v57  ;;  %v1978_v20 = vadd.f32 %v1971_v47, %v1879_v36 }
 0x1bc   : > { %2397 = vst [vmem:[%s333_s12] sm:$0xff] %v2396_v59   ;;  %v1982_v56 = vmax.f32 %v3068_v22, %v1978_v20 }
 0x1be   : > { %v1990_v0 = vadd.f32 %v2446_v9, %v1982_v56 }
 0x1bf   : > { %v1874_v32 = vpop.f32.mrf.mxu2 }
 0x1c0   : > { %v1880_v39 = vadd.f32 %v1874_v32, %v1857_v13  ;;  %v1994_v62 = vmax.f32 %v1990_v0, 0.0 }
 0x1c2   : > { %v1979_v45 = vadd.f32 %v1973_v63, %v1880_v39 }
 0x1c4   : > { %v1983_v6 = vmax.f32 %v3073_v46, %v1979_v45 }
 0x1c6   : > { %v1991_v44 = vadd.f32 %v2446_v9, %v1983_v6 }
 0x1c8   : > { %v1995_v1 = vmax.f32 %v1991_v44, 0.0 }
 0x1ca   : > { %v2401_v2 = vpack.c.bf16 %v1995_v1, %v1994_v62 }
 0x1cc   : > { %2403 = vst [vmem:[%s333_s12 + $0x8] sm:$0xff] %v2401_v2  }
 0x1cd PF: > { %s16_s25 = sadd.s32 1, %s2485_s25   ;;  %s3111_s21 = smov %s2477_s23 }
 0x1ce   : > { %p13_p7 = scmp.ge.s32.totalorder %s16_s25, 6   ;;  %s3112_s22 = smov %s2481_s24 }
 0x1cf   : > { %s3113_s23 = smov %s3116_s26  ;;  %s3114_s24 = smov %s3120_s27 }
 0x1d0   :  { %15 = sbr.rel (!%p13_p7) target bundleno = 3 (0x3), region = 99 }

</bundles_post_ra>
